<compile_context>
chip_gen: v5e
topology: v5e:2x2
jax: 0.10.0
libtpu: 0.0.40
codegen_flags: <defaults>
</compile_context>

<pallas_src>
import jax
import jax.numpy as jnp
from jax.experimental import pallas as pl
from jax.experimental.pallas import tpu as pltpu

IN_FEATURES = 2048
OUT_FEATURES = 64


def linear_kernel(x_ref, w_ref, b_ref, o_ref):
    """o = x @ Wt + b, single MXU pass per M-tile, f32 accumulate.

    x_ref: (TM, 2048), w_ref: (2048, 64), b_ref: (1, 64), o_ref: (TM, 64)
    """
    o_ref[...] = (
        jnp.dot(x_ref[...], w_ref[...], preferred_element_type=jnp.float32)
        + b_ref[...]
    ).astype(o_ref.dtype)


def _round_up(x, m):
    return ((x + m - 1) // m) * m


def _cdiv(a, b):
    return -(-a // b)


def _pick_tm(batch, kind):
    """M-tile sized from the device's scoped-VMEM budget (x is the big stream)."""
    if "v5 lite" in kind or "v5e" in kind or "v5lite" in kind:
        cap = 512    # 512*2048*4*2 (dbl-buf) + ~0.6 MiB weight ≈ 9 MiB < 16 MiB
    elif "v6" in kind:
        cap = 1024   # ~17.5 MiB < 32 MiB default scoped VMEM (128 MiB physical)
    elif "7" in kind:
        cap = 1024   # derived from v7x's 64 MiB physical VMEM; do NOT go larger
    else:
        cap = 512
    tm = min(cap, _round_up(max(batch, 1), 8))
    # v7x has 2 TensorCores: make sure there are >= 2 grid steps for mid-size B.
    if "7" in kind and batch > 8 and _cdiv(batch, tm) < 2:
        tm = max(8, _round_up(_cdiv(batch, 2), 8))
    return tm


def projection_forward(x, weight_t, bias):
    """x: (B, 2048), weight_t: (2048, 64) (pre-transposed once), bias: (64,)."""
    B, K = x.shape
    Kw, N = weight_t.shape
    assert K == IN_FEATURES and Kw == IN_FEATURES and N == OUT_FEATURES

    kind = jax.devices()[0].device_kind.lower()
    tm = _pick_tm(B, kind)
    grid = (_cdiv(B, tm),)

    b2d = bias.reshape(1, N)
    out_dtype = x.dtype
    cost = pl.CostEstimate(
        flops=2 * B * K * N,
        transcendentals=0,
        bytes_accessed=(
            B * K * x.dtype.itemsize
            + K * N * weight_t.dtype.itemsize
            + N * bias.dtype.itemsize
            + B * N * jnp.dtype(out_dtype).itemsize
        ),
    )

    def build(single_buffer_resident, semantics):
        resident_kwargs = (
            dict(pipeline_mode=pl.Buffered(1)) if single_buffer_resident else {}
        )
        return pl.pallas_call(
            linear_kernel,
            out_shape=jax.ShapeDtypeStruct((B, N), out_dtype),
            grid_spec=pltpu.PrefetchScalarGridSpec(
                num_scalar_prefetch=0,
                grid=grid,
                in_specs=[
                    # x row tile streams through VMEM (double-buffered).
                    pl.BlockSpec((tm, K), lambda i: (i, 0)),
                    # weight/bias: constant index_map -> VMEM-resident.
                    pl.BlockSpec((K, N), lambda i: (0, 0), **resident_kwargs),
                    pl.BlockSpec((1, N), lambda i: (0, 0), **resident_kwargs),
                ],
                out_specs=pl.BlockSpec((tm, N), lambda i: (i, 0)),
            ),
            compiler_params=pltpu.CompilerParams(
                dimension_semantics=semantics
            ),
            cost_estimate=cost,
        )

    # v7x: shard the M grid axis across the 2 TensorCores.
    if "7" in kind and grid[0] >= 2:
        semantics = (pltpu.CORE_PARALLEL,)
    else:
        semantics = ("parallel",)

    try:
        return build(True, semantics)(x, weight_t, b2d)
    except Exception:
        # Conservative fallback: default double-buffering + plain "parallel".
        return build(False, ("parallel",))(x, weight_t, b2d)


if __name__ == "__main__":
    key = jax.random.PRNGKey(0)
    kx, kw, kb, kx2 = jax.random.split(key, 4)

    # Deterministic parameter init (mimics nn.Linear's uniform(-1/sqrt(K), 1/sqrt(K)))
    bound = 1.0 / (IN_FEATURES ** 0.5)
    weight = jax.random.uniform(
        kw, (OUT_FEATURES, IN_FEATURES), minval=-bound, maxval=bound,
        dtype=jnp.float32)
    bias = jax.random.uniform(
        kb, (OUT_FEATURES,), minval=-bound, maxval=bound, dtype=jnp.float32)

    # One-time layout change at "parameter init" (not per call): (2048, 64).
    weight_t = jnp.asarray(weight.T)

    # Case 1: tiny batch (exercises the ragged / padded last-tile path, B < 8).
    B = 2
    x = jax.random.normal(kx, (B, IN_FEATURES), dtype=jnp.float32)
    out = jax.block_until_ready(projection_forward(x, weight_t, bias))
    ref = x @ weight.T + bias
    assert out.shape == (B, OUT_FEATURES)
    assert jnp.allclose(out, ref, atol=1e-4, rtol=1e-4), "mismatch vs reference (B=2)"

    # Case 2: slightly larger batch on the same single tiled path.
    B2 = 40
    x2 = jax.random.normal(kx2, (B2, IN_FEATURES), dtype=jnp.float32)
    out2 = jax.block_until_ready(projection_forward(x2, weight_t, bias))
    ref2 = x2 @ weight.T + bias
    assert out2.shape == (B2, OUT_FEATURES)
    assert jnp.allclose(out2, ref2, atol=1e-4, rtol=1e-4), "mismatch vs reference (B=40)"

    print("KERNEL_OK")
</pallas_src>

<mosaic_0001>
module attributes {stable_mosaic.version = 11 : i64} {
  func.func @linear_kernel(%arg0: i32, %arg1: memref<8x2048xf32, #tpu.memory_space<vmem>>, %arg2: memref<2048x64xf32, #tpu.memory_space<vmem>>, %arg3: memref<1x64xf32, #tpu.memory_space<vmem>>, %arg4: memref<8x64xf32, #tpu.memory_space<vmem>>) attributes {dimension_semantics = [#tpu.dimension_semantics<parallel>], iteration_bounds = array<i64: 1>, scalar_prefetch = 0 : i64, scratch_operands = 0 : i64, tpu.core_type = #tpu.core_type<tc>, window_params = [{transform_indices = @transform_0, window_bounds = array<i64: 8, 2048>}, {pipeline_mode = #tpu.pipeline_mode<synchronous>, transform_indices = @transform_1, window_bounds = array<i64: 2048, 64>}, {pipeline_mode = #tpu.pipeline_mode<synchronous>, transform_indices = @transform_2, window_bounds = array<i64: 1, 64>}, {transform_indices = @transform_3, window_bounds = array<i64: 8, 64>}]} {
    %c0 = arith.constant 0 : index
    %c0_0 = arith.constant 0 : index
    %0 = vector.load %arg1[%c0, %c0_0] : memref<8x2048xf32, #tpu.memory_space<vmem>>, vector<8x2048xf32>
    %c0_1 = arith.constant 0 : index
    %c0_2 = arith.constant 0 : index
    %1 = vector.load %arg2[%c0_1, %c0_2] : memref<2048x64xf32, #tpu.memory_space<vmem>>, vector<2048x64xf32>
    %cst = arith.constant dense<0.000000e+00> : vector<8x64xf32>
    %2 = tpu.matmul %0, %1, %cst {dimension_numbers = #tpu.dot_dimension_numbers<[1], [0], [0], [1], [0, 0, 1, 1], [], []>} : vector<8x2048xf32>, vector<2048x64xf32>, vector<8x64xf32> -> vector<8x64xf32>
    %c0_3 = arith.constant 0 : index
    %c0_4 = arith.constant 0 : index
    %3 = vector.load %arg3[%c0_3, %c0_4] : memref<1x64xf32, #tpu.memory_space<vmem>>, vector<1x64xf32>
    %4 = vector.broadcast %3 : vector<1x64xf32> to vector<8x64xf32>
    %5 = arith.addf %2, %4 : vector<8x64xf32>
    %c0_5 = arith.constant 0 : index
    %c0_6 = arith.constant 0 : index
    %6 = vector.load %arg4[%c0_5, %c0_6] : memref<8x64xf32, #tpu.memory_space<vmem>>, vector<8x64xf32>
    tpu.vector_store %arg4[%c0_5, %c0_6], %5 {strides = array<i32>} : memref<8x64xf32, #tpu.memory_space<vmem>>, vector<8x64xf32>,
    return
  }
  func.func @transform_0(%arg0: i32) -> (i32, i32) {
    %c0_i32 = arith.constant 0 : i32
    %c0_i32_0 = arith.constant 0 : i32
    return %arg0, %c0_i32 : i32, i32
  }
  func.func @transform_1(%arg0: i32) -> (i32, i32) {
    %c0_i32 = arith.constant 0 : i32
    %c0_i32_0 = arith.constant 0 : i32
    %c0_i32_1 = arith.constant 0 : i32
    return %c0_i32, %c0_i32_0 : i32, i32
  }
  func.func @transform_2(%arg0: i32) -> (i32, i32) {
    %c0_i32 = arith.constant 0 : i32
    %c0_i32_0 = arith.constant 0 : i32
    %c0_i32_1 = arith.constant 0 : i32
    return %c0_i32, %c0_i32_0 : i32, i32
  }
  func.func @transform_3(%arg0: i32) -> (i32, i32) {
    %c0_i32 = arith.constant 0 : i32
    %c0_i32_0 = arith.constant 0 : i32
    return %arg0, %c0_i32 : i32, i32
  }
}

module attributes {stable_mosaic.version = 11 : i64} {
  func.func @linear_kernel(%arg0: i32, %arg1: memref<8x2048xf32, #tpu.memory_space<vmem>>, %arg2: memref<2048x64xf32, #tpu.memory_space<vmem>>, %arg3: memref<1x64xf32, #tpu.memory_space<vmem>>, %arg4: memref<8x64xf32, #tpu.memory_space<vmem>>) attributes {dimension_semantics = [#tpu.dimension_semantics<parallel>], iteration_bounds = array<i64: 1>, scalar_prefetch = 0 : i64, scratch_operands = 0 : i64, tpu.core_type = #tpu.core_type<tc>, window_params = [{transform_indices = @transform_0, window_bounds = array<i64: 8, 2048>}, {pipeline_mode = #tpu.pipeline_mode<synchronous>, transform_indices = @transform_1, window_bounds = array<i64: 2048, 64>}, {pipeline_mode = #tpu.pipeline_mode<synchronous>, transform_indices = @transform_2, window_bounds = array<i64: 1, 64>}, {transform_indices = @transform_3, window_bounds = array<i64: 8, 64>}]} {
    %c0 = arith.constant 0 : index
    %c0_0 = arith.constant 0 : index
    %0 = vector.load %arg1[%c0, %c0_0] : memref<8x2048xf32, #tpu.memory_space<vmem>>, vector<8x2048xf32>
    %c0_1 = arith.constant 0 : index
    %c0_2 = arith.constant 0 : index
    %1 = vector.load %arg2[%c0_1, %c0_2] : memref<2048x64xf32, #tpu.memory_space<vmem>>, vector<2048x64xf32>
    %cst = arith.constant dense<0.000000e+00> : vector<8x64xf32>
    %2 = tpu.matmul %0, %1, %cst {dimension_numbers = #tpu.dot_dimension_numbers<[1], [0], [0], [1], [0, 0, 1, 1], [], []>} : vector<8x2048xf32>, vector<2048x64xf32>, vector<8x64xf32> -> vector<8x64xf32>
    %c0_3 = arith.constant 0 : index
    %c0_4 = arith.constant 0 : index
    %3 = vector.load %arg3[%c0_3, %c0_4] : memref<1x64xf32, #tpu.memory_space<vmem>>, vector<1x64xf32>
    %4 = vector.broadcast %3 : vector<1x64xf32> to vector<8x64xf32>
    %5 = arith.addf %2, %4 : vector<8x64xf32>
    %c0_5 = arith.constant 0 : index
    %c0_6 = arith.constant 0 : index
    %6 = vector.load %arg4[%c0_5, %c0_6] : memref<8x64xf32, #tpu.memory_space<vmem>>, vector<8x64xf32>
    tpu.vector_store %arg4[%c0_5, %c0_6], %5 {strides = array<i32>} : memref<8x64xf32, #tpu.memory_space<vmem>>, vector<8x64xf32>,
    return
  }
  func.func @transform_0(%arg0: i32) -> (i32, i32) {
    %c0_i32 = arith.constant 0 : i32
    %c0_i32_0 = arith.constant 0 : i32
    return %arg0, %c0_i32 : i32, i32
  }
  func.func @transform_1(%arg0: i32) -> (i32, i32) {
    %c0_i32 = arith.constant 0 : i32
    %c0_i32_0 = arith.constant 0 : i32
    %c0_i32_1 = arith.constant 0 : i32
    return %c0_i32, %c0_i32_0 : i32, i32
  }
  func.func @transform_2(%arg0: i32) -> (i32, i32) {
    %c0_i32 = arith.constant 0 : i32
    %c0_i32_0 = arith.constant 0 : i32
    %c0_i32_1 = arith.constant 0 : i32
    return %c0_i32, %c0_i32_0 : i32, i32
  }
  func.func @transform_3(%arg0: i32) -> (i32, i32) {
    %c0_i32 = arith.constant 0 : i32
    %c0_i32_0 = arith.constant 0 : i32
    return %arg0, %c0_i32 : i32, i32
  }
}

</mosaic_0001>

<bundles_post_ra>
// kernel: tpu_custom_call.1
= control target key start
LH: loop header
LB: loop body
LE: loop exit
PB: predicated region body
PF: predicated region fallthrough
CT: control target
= control target key end

     0   :  { %8 = vsyncpa [#allocation3], 0  ;;  %vm682_vm0 = vcmask 523264   ;;  %s1580_s0 = inlined_call_operand.vmem [shape: f32[2,2048], index: 0, kind: input, shape index: {}]   ;;  %s1581_s1 = inlined_call_operand.vmem [shape: f32[2048,64], index: 1, kind: input, shape index: {}]   ;;  %s1582_s2 = inlined_call_operand.vmem [shape: f32[1,64], index: 2, kind: input, shape index: {}]   ;;  %s1583_s3 = inlined_call_operand.hbm [shape: f32[2,64], index: 3, kind: output, shape index: {}]  }
   0x1   :  { %v46_v0 = vld [vmem:[%s1581_s1 + $0x78] sm:$0xff]  ;;  %v45_v2 = vld [vmem:[%s1581_s1 + $0x70] sm:$0xff]  ;;  %v44_v6 = vld [vmem:[%s1581_s1 + $0x68] sm:$0xff] }
   0x2   :  { %v78_v1 = vld [vmem:[%s1581_s1 + $0x178] sm:$0xff]  ;;  %362 = vmatpush.msra.mxu0 %v46_v0  ;;  %v77_v4 = vld [vmem:[%s1581_s1 + $0x170] sm:$0xff]  ;;  %v76_v8 = vld [vmem:[%s1581_s1 + $0x168] sm:$0xff] }
   0x3   :  { %402 = vmatpush.msra.mxu2 %v78_v1  ;;  %v62_v3 = vld [vmem:[%s1581_s1 + $0xf8] sm:$0xff]  ;;  %v61_v7 = vld [vmem:[%s1581_s1 + $0xf0] sm:$0xff]  ;;  %v43_v10 = vld [vmem:[%s1581_s1 + $0x60] sm:$0xff] }
   0x4   :  { %382 = vmatpush.msra.mxu1 %v62_v3  ;;  %v94_v5 = vld [vmem:[%s1581_s1 + $0x1f8] sm:$0xff]  ;;  %363 = vmatpush.msra.mxu0 %v45_v2  ;;  %v93_v9 = vld [vmem:[%s1581_s1 + $0x1f0] sm:$0xff]  ;;  %v60_v11 = vld [vmem:[%s1581_s1 + $0xe8] sm:$0xff] }
   0x5   :  { %403 = vmatpush.msra.mxu2 %v77_v4  ;;  %422 = vmatpush.msra.mxu3 %v94_v5  ;;  %v75_v12 = vld [vmem:[%s1581_s1 + $0x160] sm:$0xff]  ;;  %v92_v13 = vld [vmem:[%s1581_s1 + $0x1e8] sm:$0xff]  ;;  %v42_v15 = vld [vmem:[%s1581_s1 + $0x58] sm:$0xff] }
   0x6   :  { %383 = vmatpush.msra.mxu1 %v61_v7  ;;  %364 = vmatpush.msra.mxu0 %v44_v6  ;;  %v59_v14 = vld [vmem:[%s1581_s1 + $0xe0] sm:$0xff]  ;;  %v74_v16 = vld [vmem:[%s1581_s1 + $0x158] sm:$0xff]  ;;  %v41_v19 = vld [vmem:[%s1581_s1 + $0x50] sm:$0xff] }
   0x7   :  { %404 = vmatpush.msra.mxu2 %v76_v8  ;;  %423 = vmatpush.msra.mxu3 %v93_v9  ;;  %v91_v17 = vld [vmem:[%s1581_s1 + $0x1e0] sm:$0xff]  ;;  %v58_v18 = vld [vmem:[%s1581_s1 + $0xd8] sm:$0xff]  ;;  %v73_v20 = vld [vmem:[%s1581_s1 + $0x150] sm:$0xff] }
   0x8   :  { %384 = vmatpush.msra.mxu1 %v60_v11  ;;  %365 = vmatpush.msra.mxu0 %v43_v10  ;;  %v90_v21 = vld [vmem:[%s1581_s1 + $0x1d8] sm:$0xff]  ;;  %v57_v22 = vld [vmem:[%s1581_s1 + $0xd0] sm:$0xff]  ;;  %v40_v23 = vld [vmem:[%s1581_s1 + $0x48] sm:$0xff] }
   0x9   :  { %405 = vmatpush.msra.mxu2 %v75_v12  ;;  %424 = vmatpush.msra.mxu3 %v92_v13  ;;  %v72_v24 = vld [vmem:[%s1581_s1 + $0x148] sm:$0xff]  ;;  %v89_v25 = vld [vmem:[%s1581_s1 + $0x1d0] sm:$0xff]  ;;  %v39_v27 = vld [vmem:[%s1581_s1 + $0x40] sm:$0xff] }
   0xa   :  { %385 = vmatpush.msra.mxu1 %v59_v14  ;;  %366 = vmatpush.msra.mxu0 %v42_v15  ;;  %v56_v26 = vld [vmem:[%s1581_s1 + $0xc8] sm:$0xff]  ;;  %v71_v28 = vld [vmem:[%s1581_s1 + $0x140] sm:$0xff]  ;;  %v38_v31 = vld [vmem:[%s1581_s1 + $0x38] sm:$0xff] }
   0xb   :  { %406 = vmatpush.msra.mxu2 %v74_v16  ;;  %425 = vmatpush.msra.mxu3 %v91_v17  ;;  %v88_v29 = vld [vmem:[%s1581_s1 + $0x1c8] sm:$0xff]  ;;  %v55_v30 = vld [vmem:[%s1581_s1 + $0xc0] sm:$0xff]  ;;  %v70_v32 = vld [vmem:[%s1581_s1 + $0x138] sm:$0xff] }
   0xc   :  { %386 = vmatpush.msra.mxu1 %v58_v18  ;;  %367 = vmatpush.msra.mxu0 %v41_v19  ;;  %v87_v33 = vld [vmem:[%s1581_s1 + $0x1c0] sm:$0xff]  ;;  %v54_v34 = vld [vmem:[%s1581_s1 + $0xb8] sm:$0xff]  ;;  %v37_v35 = vld [vmem:[%s1581_s1 + $0x30] sm:$0xff] }
   0xd   :  { %407 = vmatpush.msra.mxu2 %v73_v20  ;;  %426 = vmatpush.msra.mxu3 %v90_v21  ;;  %v69_v36 = vld [vmem:[%s1581_s1 + $0x130] sm:$0xff]  ;;  %v86_v37 = vld [vmem:[%s1581_s1 + $0x1b8] sm:$0xff]  ;;  %v36_v39 = vld [vmem:[%s1581_s1 + $0x28] sm:$0xff] }
   0xe   :  { %387 = vmatpush.msra.mxu1 %v57_v22  ;;  %368 = vmatpush.msra.mxu0 %v40_v23  ;;  %v53_v38 = vld [vmem:[%s1581_s1 + $0xb0] sm:$0xff]  ;;  %v68_v40 = vld [vmem:[%s1581_s1 + $0x128] sm:$0xff]  ;;  %v35_v43 = vld [vmem:[%s1581_s1 + $0x20] sm:$0xff] }
   0xf   :  { %408 = vmatpush.msra.mxu2 %v72_v24  ;;  %427 = vmatpush.msra.mxu3 %v89_v25  ;;  %v85_v41 = vld [vmem:[%s1581_s1 + $0x1b0] sm:$0xff]  ;;  %v52_v42 = vld [vmem:[%s1581_s1 + $0xa8] sm:$0xff]  ;;  %v67_v44 = vld [vmem:[%s1581_s1 + $0x120] sm:$0xff] }
  0x10   :  { %388 = vmatpush.msra.mxu1 %v56_v26  ;;  %369 = vmatpush.msra.mxu0 %v39_v27  ;;  %v84_v45 = vld [vmem:[%s1581_s1 + $0x1a8] sm:$0xff]  ;;  %v51_v46 = vld [vmem:[%s1581_s1 + $0xa0] sm:$0xff]  ;;  %v34_v47 = vld [vmem:[%s1581_s1 + $0x18] sm:$0xff] }
  0x11   :  { %409 = vmatpush.msra.mxu2 %v71_v28  ;;  %428 = vmatpush.msra.mxu3 %v88_v29  ;;  %v66_v48 = vld [vmem:[%s1581_s1 + $0x118] sm:$0xff]  ;;  %v83_v49 = vld [vmem:[%s1581_s1 + $0x1a0] sm:$0xff]  ;;  %v33_v51 = vld [vmem:[%s1581_s1 + $0x10] sm:$0xff] }
  0x12   :  { %389 = vmatpush.msra.mxu1 %v55_v30  ;;  %370 = vmatpush.msra.mxu0 %v38_v31  ;;  %v50_v50 = vld [vmem:[%s1581_s1 + $0x98] sm:$0xff]  ;;  %v65_v52 = vld [vmem:[%s1581_s1 + $0x110] sm:$0xff]  ;;  %v32_v55 = vld [vmem:[%s1581_s1 + $0x8] sm:$0xff] }
  0x13   :  { %410 = vmatpush.msra.mxu2 %v70_v32  ;;  %429 = vmatpush.msra.mxu3 %v87_v33  ;;  %v82_v53 = vld [vmem:[%s1581_s1 + $0x198] sm:$0xff]  ;;  %v49_v54 = vld [vmem:[%s1581_s1 + $0x90] sm:$0xff]  ;;  %v64_v56 = vld [vmem:[%s1581_s1 + $0x108] sm:$0xff] }
  0x14   :  { %390 = vmatpush.msra.mxu1 %v54_v34  ;;  %371 = vmatpush.msra.mxu0 %v37_v35  ;;  %v81_v57 = vld [vmem:[%s1581_s1 + $0x190] sm:$0xff]  ;;  %v48_v58 = vld [vmem:[%s1581_s1 + $0x88] sm:$0xff]  ;;  %v31_v59 = vld [vmem:[%s1581_s1] sm:$0xff] }
  0x15   :  { %411 = vmatpush.msra.mxu2 %v69_v36  ;;  %430 = vmatpush.msra.mxu3 %v86_v37  ;;  %v63_v60 = vld [vmem:[%s1581_s1 + $0x100] sm:$0xff]  ;;  %v80_v61 = vld [vmem:[%s1581_s1 + $0x188] sm:$0xff]  ;;  %v110_v62 = vld [vmem:[%s1581_s1 + $0x278] sm:$0xff] }
  0x16   :  { %391 = vmatpush.msra.mxu1 %v53_v38  ;;  %372 = vmatpush.msra.mxu0 %v36_v39  ;;  %v142_v63 = vld [vmem:[%s1581_s1 + $0x378] sm:$0xff]  ;;  %v47_v0 = vld [vmem:[%s1581_s1 + $0x80] sm:$0xff]  ;;  %v109_v2 = vld [vmem:[%s1581_s1 + $0x270] sm:$0xff] }
  0x17   :  { %412 = vmatpush.msra.mxu2 %v68_v40  ;;  %431 = vmatpush.msra.mxu3 %v85_v41  ;;  %v79_v1 = vld [vmem:[%s1581_s1 + $0x180] sm:$0xff]  ;;  %v126_v3 = vld [vmem:[%s1581_s1 + $0x2f8] sm:$0xff]  ;;  %v141_v4 = vld [vmem:[%s1581_s1 + $0x370] sm:$0xff] }
  0x18   :  { %392 = vmatpush.msra.mxu1 %v52_v42  ;;  %373 = vmatpush.msra.mxu0 %v35_v43  ;;  %v158_v5 = vld [vmem:[%s1581_s1 + $0x3f8] sm:$0xff]  ;;  %v108_v6 = vld [vmem:[%s1581_s1 + $0x268] sm:$0xff]  ;;  %v125_v7 = vld [vmem:[%s1581_s1 + $0x2f0] sm:$0xff] }
  0x19   :  { %413 = vmatpush.msra.mxu2 %v67_v44  ;;  %432 = vmatpush.msra.mxu3 %v84_v45  ;;  %v140_v8 = vld [vmem:[%s1581_s1 + $0x368] sm:$0xff]  ;;  %v157_v9 = vld [vmem:[%s1581_s1 + $0x3f0] sm:$0xff]  ;;  %v107_v10 = vld [vmem:[%s1581_s1 + $0x260] sm:$0xff] }
  0x1a   :  { %393 = vmatpush.msra.mxu1 %v51_v46  ;;  %374 = vmatpush.msra.mxu0 %v34_v47  ;;  %v124_v11 = vld [vmem:[%s1581_s1 + $0x2e8] sm:$0xff]  ;;  %v139_v12 = vld [vmem:[%s1581_s1 + $0x360] sm:$0xff]  ;;  %v106_v14 = vld [vmem:[%s1581_s1 + $0x258] sm:$0xff] }
  0x1b   :  { %414 = vmatpush.msra.mxu2 %v66_v48  ;;  %433 = vmatpush.msra.mxu3 %v83_v49  ;;  %v156_v13 = vld [vmem:[%s1581_s1 + $0x3e8] sm:$0xff]  ;;  %v123_v15 = vld [vmem:[%s1581_s1 + $0x2e0] sm:$0xff]  ;;  %v138_v16 = vld [vmem:[%s1581_s1 + $0x358] sm:$0xff] }
  0x1c   :  { %394 = vmatpush.msra.mxu1 %v50_v50  ;;  %375 = vmatpush.msra.mxu0 %v33_v51  ;;  %v155_v17 = vld [vmem:[%s1581_s1 + $0x3e0] sm:$0xff]  ;;  %v105_v18 = vld [vmem:[%s1581_s1 + $0x250] sm:$0xff]  ;;  %v122_v19 = vld [vmem:[%s1581_s1 + $0x2d8] sm:$0xff] }
  0x1d   :  { %415 = vmatpush.msra.mxu2 %v65_v52  ;;  %434 = vmatpush.msra.mxu3 %v82_v53  ;;  %v137_v20 = vld [vmem:[%s1581_s1 + $0x350] sm:$0xff]  ;;  %v154_v21 = vld [vmem:[%s1581_s1 + $0x3d8] sm:$0xff]  ;;  %v104_v22 = vld [vmem:[%s1581_s1 + $0x248] sm:$0xff] }
  0x1e   :  { %395 = vmatpush.msra.mxu1 %v49_v54  ;;  %376 = vmatpush.msra.mxu0 %v32_v55  ;;  %v121_v23 = vld [vmem:[%s1581_s1 + $0x2d0] sm:$0xff]  ;;  %v136_v24 = vld [vmem:[%s1581_s1 + $0x348] sm:$0xff]  ;;  %v15_v26 = vld [vmem:[%s1580_s0] sm:$0xff] }
  0x1f   :  { %416 = vmatpush.msra.mxu2 %v64_v56  ;;  %435 = vmatpush.msra.mxu3 %v81_v57  ;;  %v153_v25 = vld [vmem:[%s1581_s1 + $0x3d0] sm:$0xff]  ;;  %v19_v27 = vld [vmem:[%s1580_s0 + $0x20] sm:$0xff]  ;;  %307 = vst [vmem:[#allocation1] ss:$4 sm:$0xff] %v15_v26  ;;  %v120_v31 = vld [vmem:[%s1581_s1 + $0x2c8] sm:$0xff] }
  0x20   :  { %396 = vmatpush.msra.mxu1 %v48_v58  ;;  %377 = vmatpush.msra.mxu0 %v31_v59  ;;  %v103_v28 = vld [vmem:[%s1581_s1 + $0x240] sm:$0xff]  ;;  %309 = vst [vmem:[#allocation1 + $0x1] ss:$4 sm:$0xff] %v19_v27  ;;  %v152_v33 = vld [vmem:[%s1581_s1 + $0x3c8] sm:$0xff]  ;;  %v102_v34 = vld [vmem:[%s1581_s1 + $0x238] sm:$0xff] }
  0x21   :  { %417 = vmatpush.msra.mxu2 %v63_v60  ;;  %436 = vmatpush.msra.mxu3 %v80_v61  ;;  %v23_v29 = vld [vmem:[%s1580_s0 + $0x40] sm:$0xff]  ;;  %v134_v36 = vld [vmem:[%s1581_s1 + $0x338] sm:$0xff]  ;;  %v101_v38 = vld [vmem:[%s1581_s1 + $0x230] sm:$0xff] }
  0x22   :  { %442 = vmatpush.msrb.mxu0 %v110_v62  ;;  %397 = vmatpush.msra.mxu1 %v47_v0  ;;  %v27_v30 = vld [vmem:[%s1580_s0 + $0x60] sm:$0xff]  ;;  %311 = vst [vmem:[#allocation1 + $0x2] ss:$4 sm:$0xff] %v23_v29  ;;  %v118_v39 = vld [vmem:[%s1581_s1 + $0x2b8] sm:$0xff]  ;;  %v133_v40 = vld [vmem:[%s1581_s1 + $0x330] sm:$0xff] }
  0x23   :  { %482 = vmatpush.msrb.mxu2 %v142_v63  ;;  %437 = vmatpush.msra.mxu3 %v79_v1  ;;  %v135_v32 = vld [vmem:[%s1581_s1 + $0x340] sm:$0xff]  ;;  %313 = vst [vmem:[#allocation1 + $0x3] ss:$4 sm:$0xff] %v27_v30  ;;  %v150_v41 = vld [vmem:[%s1581_s1 + $0x3b8] sm:$0xff]  ;;  %v100_v42 = vld [vmem:[%s1581_s1 + $0x228] sm:$0xff] }
  0x24   :  { %443 = vmatpush.msrb.mxu0 %v109_v2  ;;  %462 = vmatpush.msrb.mxu1 %v126_v3  ;;  %v119_v35 = vld [vmem:[%s1581_s1 + $0x2c0] sm:$0xff]  ;;  %v117_v43 = vld [vmem:[%s1581_s1 + $0x2b0] sm:$0xff]  ;;  %v132_v44 = vld [vmem:[%s1581_s1 + $0x328] sm:$0xff] }
  0x25   :  { %483 = vmatpush.msrb.mxu2 %v141_v4  ;;  %502 = vmatpush.msrb.mxu3 %v158_v5  ;;  %v151_v37 = vld [vmem:[%s1581_s1 + $0x3c0] sm:$0xff]  ;;  %v149_v45 = vld [vmem:[%s1581_s1 + $0x3b0] sm:$0xff]  ;;  %v116_v47 = vld [vmem:[%s1581_s1 + $0x2a8] sm:$0xff] }
  0x26   :  { %444 = vmatpush.msrb.mxu0 %v108_v6  ;;  %463 = vmatpush.msrb.mxu1 %v125_v7  ;;  %v99_v46 = vld [vmem:[%s1581_s1 + $0x220] sm:$0xff]  ;;  %v16_v48 = vld [vmem:[%s1580_s0 + $0x8] sm:$0xff]  ;;  %v98_v52 = vld [vmem:[%s1581_s1 + $0x218] sm:$0xff] }
  0x27   :  { %484 = vmatpush.msrb.mxu2 %v140_v8  ;;  %503 = vmatpush.msrb.mxu3 %v157_v9  ;;  %v20_v49 = vld [vmem:[%s1580_s0 + $0x28] sm:$0xff]  ;;  %v131_v50 = vld [vmem:[%s1581_s1 + $0x320] sm:$0xff]  ;;  %315 = vst [vmem:[#allocation1 + $0x20] ss:$4 sm:$0xff] %v16_v48  ;;  %v130_v54 = vld [vmem:[%s1581_s1 + $0x318] sm:$0xff] }
  0x28   :  { %445 = vmatpush.msrb.mxu0 %v107_v10  ;;  %464 = vmatpush.msrb.mxu1 %v124_v11  ;;  %v148_v51 = vld [vmem:[%s1581_s1 + $0x3a8] sm:$0xff]  ;;  %v115_v53 = vld [vmem:[%s1581_s1 + $0x2a0] sm:$0xff]  ;;  %v17_v55 = vld [vmem:[%s1580_s0 + $0x10] sm:$0xff]  ;;  %317 = vst [vmem:[#allocation1 + $0x21] ss:$4 sm:$0xff] %v20_v49 }
  0x29   :  { %485 = vmatpush.msrb.mxu2 %v139_v12  ;;  %504 = vmatpush.msrb.mxu3 %v156_v13  ;;  %v21_v56 = vld [vmem:[%s1580_s0 + $0x30] sm:$0xff]  ;;  %v147_v62 = vld [vmem:[%s1581_s1 + $0x3a0] sm:$0xff]  ;;  %v114_v1 = vld [vmem:[%s1581_s1 + $0x298] sm:$0xff] }
  0x2a   :  { %446 = vmatpush.msrb.mxu0 %v106_v14  ;;  %465 = vmatpush.msrb.mxu1 %v123_v15  ;;  %v25_v57 = vld [vmem:[%s1580_s0 + $0x50] sm:$0xff]  ;;  %v322_v58 = vld.sshfl [vmem:[#allocation1] sm:$0xff pattern:$0x73625140]  ;;  %v24_v3 = vld [vmem:[%s1580_s0 + $0x48] sm:$0xff] }
  0x2b   :  { %486 = vmatpush.msrb.mxu2 %v138_v16  ;;  %505 = vmatpush.msrb.mxu3 %v155_v17  ;;  %v324_v59 = vld.sshfl [vmem:[#allocation1 + $0x10] sm:$0xff pattern:$0x73625140]  ;;  %v323_v60 = vld.sshfl [vmem:[#allocation1 + $0x8] sm:$0xff pattern:$0x73625140] }
  0x2c   :  { %447 = vmatpush.msrb.mxu0 %v105_v18  ;;  %466 = vmatpush.msrb.mxu1 %v122_v19  ;;  %v1121_v61 = vld.sshfl [vmem:[#allocation1 + $0x18] sm:$0xff pattern:$0x73625140]  ;;  %v97_v63 = vld [vmem:[%s1581_s1 + $0x210] sm:$0xff]  ;;  %v96_v5 = vld [vmem:[%s1581_s1 + $0x208] sm:$0xff] }
  0x2d   :  { %487 = vmatpush.msrb.mxu2 %v137_v20  ;;  %506 = vmatpush.msrb.mxu3 %v154_v21  ;;  %v29_v0 = vld [vmem:[%s1580_s0 + $0x70] sm:$0xff]  ;;  %330 = vst [vmem:[#allocation1] ss:$4 sm:$0xff] %v17_v55  ;;  %v146_v4 = vld [vmem:[%s1581_s1 + $0x398] sm:$0xff]  ;;  %v28_v6 = vld [vmem:[%s1580_s0 + $0x68] sm:$0xff] }
  0x2e   :  { %448 = vmatpush.msrb.mxu0 %v104_v22  ;;  %467 = vmatpush.msrb.mxu1 %v121_v23  ;;  %v129_v2 = vld [vmem:[%s1581_s1 + $0x310] sm:$0xff]  ;;  %331 = vst [vmem:[#allocation1 + $0x1] ss:$4 sm:$0xff] %v21_v56  ;;  %v128_v8 = vld [vmem:[%s1581_s1 + $0x308] sm:$0xff]  ;;  %v95_v10 = vld [vmem:[%s1581_s1 + $0x200] sm:$0xff] }
  0x2f   :  { %488 = vmatpush.msrb.mxu2 %v136_v24  ;;  %507 = vmatpush.msrb.mxu3 %v153_v25  ;;  %332 = vst [vmem:[#allocation1 + $0x2] ss:$4 sm:$0xff] %v25_v57  ;;  %v113_v7 = vld [vmem:[%s1581_s1 + $0x290] sm:$0xff]  ;;  %v112_v11 = vld [vmem:[%s1581_s1 + $0x288] sm:$0xff]  ;;  %v127_v12 = vld [vmem:[%s1581_s1 + $0x300] sm:$0xff] }
  0x30   :  { %449 = vmatpush.msrb.mxu0 %v103_v28  ;;  %468 = vmatpush.msrb.mxu1 %v120_v31  ;;  %333 = vst [vmem:[#allocation1 + $0x3] ss:$4 sm:$0xff] %v29_v0  ;;  %v145_v9 = vld [vmem:[%s1581_s1 + $0x390] sm:$0xff]  ;;  %v144_v13 = vld [vmem:[%s1581_s1 + $0x388] sm:$0xff]  ;;  %v174_v14 = vld [vmem:[%s1581_s1 + $0x478] sm:$0xff] }
  0x31   :  { %489 = vmatpush.msrb.mxu2 %v135_v32  ;;  %508 = vmatpush.msrb.mxu3 %v152_v33  ;;  %319 = vst [vmem:[#allocation1 + $0x22] ss:$4 sm:$0xff] %v24_v3  ;;  %v206_v15 = vld [vmem:[%s1581_s1 + $0x578] sm:$0xff]  ;;  %v111_v16 = vld [vmem:[%s1581_s1 + $0x280] sm:$0xff]  ;;  %v173_v18 = vld [vmem:[%s1581_s1 + $0x470] sm:$0xff] }
  0x32   :  { %450 = vmatpush.msrb.mxu0 %v102_v34  ;;  %469 = vmatpush.msrb.mxu1 %v119_v35  ;;  %321 = vst [vmem:[#allocation1 + $0x23] ss:$4 sm:$0xff] %v28_v6  ;;  %v143_v17 = vld [vmem:[%s1581_s1 + $0x380] sm:$0xff]  ;;  %v190_v19 = vld [vmem:[%s1581_s1 + $0x4f8] sm:$0xff]  ;;  %v205_v20 = vld [vmem:[%s1581_s1 + $0x570] sm:$0xff] }
  0x33   :  { %490 = vmatpush.msrb.mxu2 %v134_v36  ;;  %509 = vmatpush.msrb.mxu3 %v151_v37  ;;  %v222_v21 = vld [vmem:[%s1581_s1 + $0x5f8] sm:$0xff]  ;;  %v172_v22 = vld [vmem:[%s1581_s1 + $0x468] sm:$0xff]  ;;  %v189_v23 = vld [vmem:[%s1581_s1 + $0x4f0] sm:$0xff] }
  0x34   :  { %451 = vmatpush.msrb.mxu0 %v101_v38  ;;  %470 = vmatpush.msrb.mxu1 %v118_v39  ;;  %v204_v24 = vld [vmem:[%s1581_s1 + $0x568] sm:$0xff]  ;;  %v18_v25 = vld [vmem:[%s1580_s0 + $0x18] sm:$0xff]  ;;  %v221_v32 = vld [vmem:[%s1581_s1 + $0x5f0] sm:$0xff] }
  0x35   :  { %491 = vmatpush.msrb.mxu2 %v133_v40  ;;  %510 = vmatpush.msrb.mxu3 %v150_v41  ;;  %v22_v26 = vld [vmem:[%s1580_s0 + $0x38] sm:$0xff]  ;;  %v171_v33 = vld [vmem:[%s1581_s1 + $0x460] sm:$0xff]  ;;  %v188_v35 = vld [vmem:[%s1581_s1 + $0x4e8] sm:$0xff] }
  0x36   :  { %452 = vmatpush.msrb.mxu0 %v100_v42  ;;  %471 = vmatpush.msrb.mxu1 %v117_v43  ;;  %v26_v27 = vld [vmem:[%s1580_s0 + $0x58] sm:$0xff]  ;;  %v203_v36 = vld [vmem:[%s1581_s1 + $0x560] sm:$0xff]  ;;  %v220_v37 = vld [vmem:[%s1581_s1 + $0x5e8] sm:$0xff] }
  0x37   :  { %492 = vmatpush.msrb.mxu2 %v132_v44  ;;  %511 = vmatpush.msrb.mxu3 %v149_v45  ;;  %v30_v34 = vld [vmem:[%s1580_s0 + $0x78] sm:$0xff]  ;;  %v187_v39 = vld [vmem:[%s1581_s1 + $0x4e0] sm:$0xff]  ;;  %v169_v42 = vld [vmem:[%s1581_s1 + $0x450] sm:$0xff] }
  0x38   :  { %453 = vmatpush.msrb.mxu0 %v99_v46  ;;  %472 = vmatpush.msrb.mxu1 %v116_v47  ;;  %v170_v38 = vld [vmem:[%s1581_s1 + $0x458] sm:$0xff]  ;;  %v219_v41 = vld [vmem:[%s1581_s1 + $0x5e0] sm:$0xff]  ;;  %v201_v44 = vld [vmem:[%s1581_s1 + $0x550] sm:$0xff] }
  0x39   :  { %493 = vmatpush.msrb.mxu2 %v131_v50  ;;  %512 = vmatpush.msrb.mxu3 %v148_v51  ;;  %v328_v28 = vld.sshfl [vmem:[#allocation1 + $0x30] sm:$0xff pattern:$0x73625140]  ;;  %v326_v29 = vld.sshfl [vmem:[#allocation1 + $0x20] sm:$0xff pattern:$0x73625140] }
  0x3a   :  { %454 = vmatpush.msrb.mxu0 %v98_v52  ;;  %473 = vmatpush.msrb.mxu1 %v115_v53  ;;  %v329_v30 = vld.sshfl [vmem:[#allocation1 + $0x38] sm:$0xff pattern:$0x73625140]  ;;  %v327_v31 = vld.sshfl [vmem:[#allocation1 + $0x28] sm:$0xff pattern:$0x73625140] }
  0x3b   :  { %494 = vmatpush.msrb.mxu2 %v130_v54  ;;  %513 = vmatpush.msrb.mxu3 %v147_v62  ;;  %334 = vst [vmem:[#allocation1 + $0x20] ss:$4 sm:$0xff] %v18_v25  ;;  %v202_v40 = vld [vmem:[%s1581_s1 + $0x558] sm:$0xff]  ;;  %v168_v46 = vld [vmem:[%s1581_s1 + $0x448] sm:$0xff]  ;;  %v185_v47 = vld [vmem:[%s1581_s1 + $0x4d0] sm:$0xff] }
  0x3c   :  { %455 = vmatpush.msrb.mxu0 %v97_v63  ;;  %474 = vmatpush.msrb.mxu1 %v114_v1  ;;  %335 = vst [vmem:[#allocation1 + $0x21] ss:$4 sm:$0xff] %v22_v26  ;;  %v186_v43 = vld [vmem:[%s1581_s1 + $0x4d8] sm:$0xff]  ;;  %v200_v48 = vld [vmem:[%s1581_s1 + $0x548] sm:$0xff]  ;;  %v217_v49 = vld [vmem:[%s1581_s1 + $0x5d0] sm:$0xff] }
  0x3d   :  { %495 = vmatpush.msrb.mxu2 %v129_v2  ;;  %514 = vmatpush.msrb.mxu3 %v146_v4  ;;  %336 = vst [vmem:[#allocation1 + $0x22] ss:$4 sm:$0xff] %v26_v27  ;;  %v218_v45 = vld [vmem:[%s1581_s1 + $0x5d8] sm:$0xff]  ;;  %v167_v50 = vld [vmem:[%s1581_s1 + $0x440] sm:$0xff]  ;;  %v184_v51 = vld [vmem:[%s1581_s1 + $0x4c8] sm:$0xff] }
  0x3e   :  { %456 = vmatpush.msrb.mxu0 %v96_v5  ;;  %475 = vmatpush.msrb.mxu1 %v113_v7  ;;  %337 = vst [vmem:[#allocation1 + $0x23] ss:$4 sm:$0xff] %v30_v34  ;;  %v199_v52 = vld [vmem:[%s1581_s1 + $0x540] sm:$0xff]  ;;  %v216_v53 = vld [vmem:[%s1581_s1 + $0x5c8] sm:$0xff]  ;;  %v166_v54 = vld [vmem:[%s1581_s1 + $0x438] sm:$0xff] }
  0x3f   :  { %496 = vmatpush.msrb.mxu2 %v128_v8  ;;  %515 = vmatpush.msrb.mxu3 %v145_v9  ;;  %v183_v55 = vld [vmem:[%s1581_s1 + $0x4c0] sm:$0xff]  ;;  %v198_v56 = vld [vmem:[%s1581_s1 + $0x538] sm:$0xff]  ;;  %v164_v62 = vld [vmem:[%s1581_s1 + $0x428] sm:$0xff] }
  0x40   :  { %457 = vmatpush.msrb.mxu0 %v95_v10  ;;  %476 = vmatpush.msrb.mxu1 %v112_v11  ;;  %v215_v57 = vld [vmem:[%s1581_s1 + $0x5c0] sm:$0xff]  ;;  %v181_v63 = vld [vmem:[%s1581_s1 + $0x4b0] sm:$0xff]  ;;  %v196_v0 = vld [vmem:[%s1581_s1 + $0x528] sm:$0xff] }
  0x41   :  { %497 = vmatpush.msrb.mxu2 %v127_v12  ;;  %516 = vmatpush.msrb.mxu3 %v144_v13  ;;  %v213_v1 = vld [vmem:[%s1581_s1 + $0x5b0] sm:$0xff]  ;;  %v163_v2 = vld [vmem:[%s1581_s1 + $0x420] sm:$0xff]  ;;  %v180_v3 = vld [vmem:[%s1581_s1 + $0x4a8] sm:$0xff] }
  0x42   :  { %378 = vmatmul.f32.vlgmr.msra.gmra.mxu0 %v322_v58  ;;  %418 = vmatmul.f32.vlgmr.msra.gmra.mxu2 %v324_v59  ;;  %v165_v58 = vld [vmem:[%s1581_s1 + $0x430] sm:$0xff]  ;;  %v182_v59 = vld [vmem:[%s1581_s1 + $0x4b8] sm:$0xff]  ;;  %v195_v4 = vld [vmem:[%s1581_s1 + $0x520] sm:$0xff] }
  0x43   :  { %522 = vmatpush.msra.mxu0 %v174_v14  ;;  %562 = vmatpush.msra.mxu2 %v206_v15  ;;  %v212_v5 = vld [vmem:[%s1581_s1 + $0x5a8] sm:$0xff]  ;;  %v162_v6 = vld [vmem:[%s1581_s1 + $0x418] sm:$0xff]  ;;  %v179_v7 = vld [vmem:[%s1581_s1 + $0x4a0] sm:$0xff] }
  0x44   :  { %477 = vmatpush.msrb.mxu1 %v111_v16  ;;  %517 = vmatpush.msrb.mxu3 %v143_v17  ;;  %v194_v8 = vld [vmem:[%s1581_s1 + $0x518] sm:$0xff]  ;;  %v211_v9 = vld [vmem:[%s1581_s1 + $0x5a0] sm:$0xff]  ;;  %v161_v10 = vld [vmem:[%s1581_s1 + $0x410] sm:$0xff] }
  0x45   :  { %398 = vmatmul.f32.vlgmr.msra.gmra.mxu1 %v323_v60  ;;  %438 = vmatmul.f32.vlgmr.msra.gmra.mxu3 %v1121_v61  ;;  %v197_v60 = vld [vmem:[%s1581_s1 + $0x530] sm:$0xff]  ;;  %v214_v61 = vld [vmem:[%s1581_s1 + $0x5b8] sm:$0xff]  ;;  %v160_v14 = vld [vmem:[%s1581_s1 + $0x408] sm:$0xff] }
  0x46   :  { %523 = vmatpush.msra.mxu0 %v173_v18  ;;  %542 = vmatpush.msra.mxu1 %v190_v19  ;;  %v178_v11 = vld [vmem:[%s1581_s1 + $0x498] sm:$0xff]  ;;  %v193_v12 = vld [vmem:[%s1581_s1 + $0x510] sm:$0xff]  ;;  %v192_v16 = vld [vmem:[%s1581_s1 + $0x508] sm:$0xff] }
  0x47   :  { %563 = vmatpush.msra.mxu2 %v205_v20  ;;  %582 = vmatpush.msra.mxu3 %v222_v21  ;;  %v210_v13 = vld [vmem:[%s1581_s1 + $0x598] sm:$0xff]  ;;  %v177_v15 = vld [vmem:[%s1581_s1 + $0x490] sm:$0xff]  ;;  %v159_v18 = vld [vmem:[%s1581_s1 + $0x400] sm:$0xff] }
  0x48   :  { %524 = vmatpush.msra.mxu0 %v172_v22  ;;  %543 = vmatpush.msra.mxu1 %v189_v23  ;;  %v209_v17 = vld [vmem:[%s1581_s1 + $0x590] sm:$0xff]  ;;  %v176_v19 = vld [vmem:[%s1581_s1 + $0x488] sm:$0xff]  ;;  %v191_v20 = vld [vmem:[%s1581_s1 + $0x500] sm:$0xff] }
  0x49   :  { %564 = vmatpush.msra.mxu2 %v204_v24  ;;  %583 = vmatpush.msra.mxu3 %v221_v32  ;;  %v208_v21 = vld [vmem:[%s1581_s1 + $0x588] sm:$0xff]  ;;  %v338_v22 = vld.sshfl [vmem:[#allocation1] sm:$0xff pattern:$0x73625140]  ;;  %v238_v24 = vld [vmem:[%s1581_s1 + $0x678] sm:$0xff] }
  0x4a   :  { %525 = vmatpush.msra.mxu0 %v171_v33  ;;  %544 = vmatpush.msra.mxu1 %v188_v35  ;;  %v340_v23 = vld.sshfl [vmem:[#allocation1 + $0x10] sm:$0xff pattern:$0x73625140]  ;;  %v270_v25 = vld [vmem:[%s1581_s1 + $0x778] sm:$0xff]  ;;  %v175_v26 = vld [vmem:[%s1581_s1 + $0x480] sm:$0xff] }
  0x4b   :  { %565 = vmatpush.msra.mxu2 %v203_v36  ;;  %584 = vmatpush.msra.mxu3 %v220_v37  ;;  %v207_v27 = vld [vmem:[%s1581_s1 + $0x580] sm:$0xff]  ;;  %v269_v32 = vld [vmem:[%s1581_s1 + $0x770] sm:$0xff]  ;;  %v286_v33 = vld [vmem:[%s1581_s1 + $0x7f8] sm:$0xff] }
  0x4c   :  { %498 = vmatmul.f32.vlgmr.msrb.gmra.mxu2 %v328_v28  ;;  %526 = vmatpush.msra.mxu0 %v170_v38  ;;  %v339_v28 = vld.sshfl [vmem:[#allocation1 + $0x8] sm:$0xff pattern:$0x73625140]  ;;  %v253_v35 = vld [vmem:[%s1581_s1 + $0x6f0] sm:$0xff]  ;;  %v235_v38 = vld [vmem:[%s1581_s1 + $0x660] sm:$0xff] }
  0x4d   :  { %545 = vmatpush.msra.mxu1 %v187_v39  ;;  %566 = vmatpush.msra.mxu2 %v202_v40  ;;  %v236_v34 = vld [vmem:[%s1581_s1 + $0x668] sm:$0xff]  ;;  %v285_v37 = vld [vmem:[%s1581_s1 + $0x7f0] sm:$0xff]  ;;  %v267_v40 = vld [vmem:[%s1581_s1 + $0x760] sm:$0xff] }
  0x4e   :  { %585 = vmatpush.msra.mxu3 %v219_v41  ;;  %458 = vmatmul.f32.vlgmr.msrb.gmra.mxu0 %v326_v29  ;;  %v341_v29 = vld.sshfl [vmem:[#allocation1 + $0x18] sm:$0xff pattern:$0x73625140]  ;;  %v268_v36 = vld [vmem:[%s1581_s1 + $0x768] sm:$0xff] }
  0x4f   :  { %518 = vmatmul.f32.vlgmr.msrb.gmra.mxu3 %v329_v30  ;;  %527 = vmatpush.msra.mxu0 %v169_v42  ;;  %v237_v30 = vld [vmem:[%s1581_s1 + $0x670] sm:$0xff]  ;;  %v252_v39 = vld [vmem:[%s1581_s1 + $0x6e8] sm:$0xff]  ;;  %v234_v42 = vld [vmem:[%s1581_s1 + $0x658] sm:$0xff] }
  0x50   :  { %546 = vmatpush.msra.mxu1 %v186_v43  ;;  %567 = vmatpush.msra.mxu2 %v201_v44  ;;  %v284_v41 = vld [vmem:[%s1581_s1 + $0x7e8] sm:$0xff]  ;;  %v251_v43 = vld [vmem:[%s1581_s1 + $0x6e0] sm:$0xff]  ;;  %v266_v44 = vld [vmem:[%s1581_s1 + $0x758] sm:$0xff] }
  0x51   :  { %586 = vmatpush.msra.mxu3 %v218_v45  ;;  %478 = vmatmul.f32.vlgmr.msrb.gmra.mxu1 %v327_v31  ;;  %v254_v31 = vld [vmem:[%s1581_s1 + $0x6f8] sm:$0xff]  ;;  %v283_v45 = vld [vmem:[%s1581_s1 + $0x7e0] sm:$0xff] }
  0x52   :  { %528 = vmatpush.msra.mxu0 %v168_v46  ;;  %547 = vmatpush.msra.mxu1 %v185_v47  ;;  %v233_v46 = vld [vmem:[%s1581_s1 + $0x650] sm:$0xff]  ;;  %v250_v47 = vld [vmem:[%s1581_s1 + $0x6d8] sm:$0xff] }
  0x53   :  { %568 = vmatpush.msra.mxu2 %v200_v48  ;;  %587 = vmatpush.msra.mxu3 %v217_v49  ;;  %v265_v48 = vld [vmem:[%s1581_s1 + $0x750] sm:$0xff]  ;;  %v282_v49 = vld [vmem:[%s1581_s1 + $0x7d8] sm:$0xff] }
  0x54   :  { %529 = vmatpush.msra.mxu0 %v167_v50  ;;  %548 = vmatpush.msra.mxu1 %v184_v51  ;;  %v232_v50 = vld [vmem:[%s1581_s1 + $0x648] sm:$0xff]  ;;  %v249_v51 = vld [vmem:[%s1581_s1 + $0x6d0] sm:$0xff] }
  0x55   :  { %569 = vmatpush.msra.mxu2 %v199_v52  ;;  %588 = vmatpush.msra.mxu3 %v216_v53  ;;  %v264_v52 = vld [vmem:[%s1581_s1 + $0x748] sm:$0xff]  ;;  %v281_v53 = vld [vmem:[%s1581_s1 + $0x7d0] sm:$0xff] }
  0x56   :  { %530 = vmatpush.msra.mxu0 %v166_v54  ;;  %549 = vmatpush.msra.mxu1 %v183_v55  ;;  %v231_v54 = vld [vmem:[%s1581_s1 + $0x640] sm:$0xff]  ;;  %v248_v55 = vld [vmem:[%s1581_s1 + $0x6c8] sm:$0xff] }
  0x57   :  { %570 = vmatpush.msra.mxu2 %v198_v56  ;;  %589 = vmatpush.msra.mxu3 %v215_v57  ;;  %v263_v56 = vld [vmem:[%s1581_s1 + $0x740] sm:$0xff]  ;;  %v280_v57 = vld [vmem:[%s1581_s1 + $0x7c8] sm:$0xff] }
  0x58   :  { %531 = vmatpush.msra.mxu0 %v165_v58  ;;  %550 = vmatpush.msra.mxu1 %v182_v59  ;;  %v230_v58 = vld [vmem:[%s1581_s1 + $0x638] sm:$0xff]  ;;  %v247_v59 = vld [vmem:[%s1581_s1 + $0x6c0] sm:$0xff] }
  0x59   :  { %571 = vmatpush.msra.mxu2 %v197_v60  ;;  %590 = vmatpush.msra.mxu3 %v214_v61  ;;  %v262_v60 = vld [vmem:[%s1581_s1 + $0x738] sm:$0xff]  ;;  %v279_v61 = vld [vmem:[%s1581_s1 + $0x7c0] sm:$0xff] }
  0x5a   :  { %532 = vmatpush.msra.mxu0 %v164_v62  ;;  %551 = vmatpush.msra.mxu1 %v181_v63  ;;  %v229_v62 = vld [vmem:[%s1581_s1 + $0x630] sm:$0xff]  ;;  %v246_v63 = vld [vmem:[%s1581_s1 + $0x6b8] sm:$0xff] }
  0x5b   :  { %572 = vmatpush.msra.mxu2 %v196_v0  ;;  %591 = vmatpush.msra.mxu3 %v213_v1  ;;  %v261_v0 = vld [vmem:[%s1581_s1 + $0x730] sm:$0xff]  ;;  %v278_v1 = vld [vmem:[%s1581_s1 + $0x7b8] sm:$0xff] }
  0x5c   :  { %533 = vmatpush.msra.mxu0 %v163_v2  ;;  %552 = vmatpush.msra.mxu1 %v180_v3  ;;  %v228_v2 = vld [vmem:[%s1581_s1 + $0x628] sm:$0xff]  ;;  %v245_v3 = vld [vmem:[%s1581_s1 + $0x6b0] sm:$0xff] }
  0x5d   :  { %573 = vmatpush.msra.mxu2 %v195_v4  ;;  %592 = vmatpush.msra.mxu3 %v212_v5  ;;  %v260_v4 = vld [vmem:[%s1581_s1 + $0x728] sm:$0xff]  ;;  %v277_v5 = vld [vmem:[%s1581_s1 + $0x7b0] sm:$0xff] }
  0x5e   :  { %534 = vmatpush.msra.mxu0 %v162_v6  ;;  %553 = vmatpush.msra.mxu1 %v179_v7  ;;  %v227_v6 = vld [vmem:[%s1581_s1 + $0x620] sm:$0xff]  ;;  %v244_v7 = vld [vmem:[%s1581_s1 + $0x6a8] sm:$0xff] }
  0x5f   :  { %574 = vmatpush.msra.mxu2 %v194_v8  ;;  %593 = vmatpush.msra.mxu3 %v211_v9  ;;  %v259_v8 = vld [vmem:[%s1581_s1 + $0x720] sm:$0xff]  ;;  %v276_v9 = vld [vmem:[%s1581_s1 + $0x7a8] sm:$0xff] }
  0x60   :  { %535 = vmatpush.msra.mxu0 %v161_v10  ;;  %554 = vmatpush.msra.mxu1 %v178_v11  ;;  %v226_v10 = vld [vmem:[%s1581_s1 + $0x618] sm:$0xff]  ;;  %v243_v11 = vld [vmem:[%s1581_s1 + $0x6a0] sm:$0xff] }
  0x61   :  { %575 = vmatpush.msra.mxu2 %v193_v12  ;;  %594 = vmatpush.msra.mxu3 %v210_v13  ;;  %v258_v12 = vld [vmem:[%s1581_s1 + $0x718] sm:$0xff]  ;;  %v275_v13 = vld [vmem:[%s1581_s1 + $0x7a0] sm:$0xff] }
  0x62   :  { %536 = vmatpush.msra.mxu0 %v160_v14  ;;  %555 = vmatpush.msra.mxu1 %v177_v15  ;;  %v225_v14 = vld [vmem:[%s1581_s1 + $0x610] sm:$0xff]  ;;  %v242_v15 = vld [vmem:[%s1581_s1 + $0x698] sm:$0xff] }
  0x63   :  { %576 = vmatpush.msra.mxu2 %v192_v16  ;;  %595 = vmatpush.msra.mxu3 %v209_v17  ;;  %v257_v16 = vld [vmem:[%s1581_s1 + $0x710] sm:$0xff]  ;;  %v274_v17 = vld [vmem:[%s1581_s1 + $0x798] sm:$0xff] }
  0x64   :  { %537 = vmatpush.msra.mxu0 %v159_v18  ;;  %556 = vmatpush.msra.mxu1 %v176_v19  ;;  %v224_v18 = vld [vmem:[%s1581_s1 + $0x608] sm:$0xff]  ;;  %v241_v19 = vld [vmem:[%s1581_s1 + $0x690] sm:$0xff] }
  0x65   :  { %577 = vmatpush.msra.mxu2 %v191_v20  ;;  %596 = vmatpush.msra.mxu3 %v208_v21  ;;  %v256_v20 = vld [vmem:[%s1581_s1 + $0x708] sm:$0xff]  ;;  %v273_v21 = vld [vmem:[%s1581_s1 + $0x790] sm:$0xff] }
  0x66   :  { %538 = vmatmul.f32.vlgmr.msra.gmra.mxu0 %v338_v22  ;;  %578 = vmatmul.f32.vlgmr.msra.gmra.mxu2 %v340_v23  ;;  %v223_v22 = vld [vmem:[%s1581_s1 + $0x600] sm:$0xff]  ;;  %v240_v23 = vld [vmem:[%s1581_s1 + $0x688] sm:$0xff] }
  0x67   :  { %602 = vmatpush.msrb.mxu0 %v238_v24  ;;  %642 = vmatpush.msrb.mxu2 %v270_v25  ;;  %v255_v24 = vld [vmem:[%s1581_s1 + $0x700] sm:$0xff]  ;;  %v272_v25 = vld [vmem:[%s1581_s1 + $0x788] sm:$0xff] }
  0x68   :  { %557 = vmatpush.msra.mxu1 %v175_v26  ;;  %597 = vmatpush.msra.mxu3 %v207_v27  ;;  %v342_v26 = vld.sshfl [vmem:[#allocation1 + $0x20] sm:$0xff pattern:$0x73625140]  ;;  %v344_v27 = vld.sshfl [vmem:[#allocation1 + $0x30] sm:$0xff pattern:$0x73625140] }
  0x69   :  { %558 = vmatmul.f32.vlgmr.msra.gmra.mxu1 %v339_v28  ;;  %598 = vmatmul.f32.vlgmr.msra.gmra.mxu3 %v341_v29  ;;  %v239_v28 = vld [vmem:[%s1581_s1 + $0x680] sm:$0xff] }
  0x6a   :  { %603 = vmatpush.msrb.mxu0 %v237_v30  ;;  %622 = vmatpush.msrb.mxu1 %v254_v31  ;;  %v271_v29 = vld [vmem:[%s1581_s1 + $0x780] sm:$0xff]  ;;  %v343_v30 = vld.sshfl [vmem:[#allocation1 + $0x28] sm:$0xff pattern:$0x73625140] }
  0x6b   :  { %643 = vmatpush.msrb.mxu2 %v269_v32  ;;  %662 = vmatpush.msrb.mxu3 %v286_v33  ;;  %v345_v31 = vld.sshfl [vmem:[#allocation1 + $0x38] sm:$0xff pattern:$0x73625140]  ;;  %v705_v32 = vld [vmem:[%s1582_s2] ss:$0 sm:$0xff] }
  0x6c   :  { %604 = vmatpush.msrb.mxu0 %v236_v34  ;;  %623 = vmatpush.msrb.mxu1 %v253_v35 }
  0x6d   :  { %644 = vmatpush.msrb.mxu2 %v268_v36  ;;  %663 = vmatpush.msrb.mxu3 %v285_v37 }
  0x6e   :  { %605 = vmatpush.msrb.mxu0 %v235_v38  ;;  %624 = vmatpush.msrb.mxu1 %v252_v39 }
  0x6f   :  { %645 = vmatpush.msrb.mxu2 %v267_v40  ;;  %664 = vmatpush.msrb.mxu3 %v284_v41 }
  0x70   :  { %606 = vmatpush.msrb.mxu0 %v234_v42  ;;  %625 = vmatpush.msrb.mxu1 %v251_v43 }
  0x71   :  { %646 = vmatpush.msrb.mxu2 %v266_v44  ;;  %665 = vmatpush.msrb.mxu3 %v283_v45 }
  0x72   :  { %607 = vmatpush.msrb.mxu0 %v233_v46  ;;  %626 = vmatpush.msrb.mxu1 %v250_v47 }
  0x73   :  { %647 = vmatpush.msrb.mxu2 %v265_v48  ;;  %666 = vmatpush.msrb.mxu3 %v282_v49 }
  0x74   :  { %608 = vmatpush.msrb.mxu0 %v232_v50  ;;  %627 = vmatpush.msrb.mxu1 %v249_v51 }
  0x75   :  { %648 = vmatpush.msrb.mxu2 %v264_v52  ;;  %667 = vmatpush.msrb.mxu3 %v281_v53 }
  0x76   :  { %609 = vmatpush.msrb.mxu0 %v231_v54  ;;  %628 = vmatpush.msrb.mxu1 %v248_v55 }
  0x77   :  { %649 = vmatpush.msrb.mxu2 %v263_v56  ;;  %668 = vmatpush.msrb.mxu3 %v280_v57 }
  0x78   :  { %610 = vmatpush.msrb.mxu0 %v230_v58  ;;  %629 = vmatpush.msrb.mxu1 %v247_v59 }
  0x79   :  { %650 = vmatpush.msrb.mxu2 %v262_v60  ;;  %669 = vmatpush.msrb.mxu3 %v279_v61 }
  0x7a   :  { %611 = vmatpush.msrb.mxu0 %v229_v62  ;;  %630 = vmatpush.msrb.mxu1 %v246_v63 }
  0x7b   :  { %651 = vmatpush.msrb.mxu2 %v261_v0  ;;  %670 = vmatpush.msrb.mxu3 %v278_v1 }
  0x7c   :  { %612 = vmatpush.msrb.mxu0 %v228_v2  ;;  %631 = vmatpush.msrb.mxu1 %v245_v3 }
  0x7d   :  { %652 = vmatpush.msrb.mxu2 %v260_v4  ;;  %671 = vmatpush.msrb.mxu3 %v277_v5 }
  0x7e   :  { %613 = vmatpush.msrb.mxu0 %v227_v6  ;;  %632 = vmatpush.msrb.mxu1 %v244_v7 }
  0x7f   :  { %653 = vmatpush.msrb.mxu2 %v259_v8  ;;  %672 = vmatpush.msrb.mxu3 %v276_v9 }
  0x80   :  { %614 = vmatpush.msrb.mxu0 %v226_v10  ;;  %633 = vmatpush.msrb.mxu1 %v243_v11 }
  0x81   :  { %654 = vmatpush.msrb.mxu2 %v258_v12  ;;  %673 = vmatpush.msrb.mxu3 %v275_v13 }
  0x82   :  { %615 = vmatpush.msrb.mxu0 %v225_v14  ;;  %634 = vmatpush.msrb.mxu1 %v242_v15 }
  0x83   :  { %655 = vmatpush.msrb.mxu2 %v257_v16  ;;  %674 = vmatpush.msrb.mxu3 %v274_v17 }
  0x84   :  { %616 = vmatpush.msrb.mxu0 %v224_v18  ;;  %635 = vmatpush.msrb.mxu1 %v241_v19 }
  0x85   :  { %656 = vmatpush.msrb.mxu2 %v256_v20  ;;  %675 = vmatpush.msrb.mxu3 %v273_v21 }
  0x86   :  { %617 = vmatpush.msrb.mxu0 %v223_v22  ;;  %636 = vmatpush.msrb.mxu1 %v240_v23 }
  0x87   :  { %657 = vmatpush.msrb.mxu2 %v255_v24  ;;  %676 = vmatpush.msrb.mxu3 %v272_v25 }
  0x88   :  { %618 = vmatmul.f32.vlgmr.msrb.gmra.mxu0 %v342_v26  ;;  %658 = vmatmul.f32.vlgmr.msrb.gmra.mxu2 %v344_v27 }
  0x89   :  { %637 = vmatpush.msrb.mxu1 %v239_v28  ;;  %677 = vmatpush.msrb.mxu3 %v271_v29 }
  0x8a   :  { %638 = vmatmul.f32.vlgmr.msrb.gmra.mxu1 %v343_v30  ;;  %678 = vmatmul.f32.vlgmr.msrb.gmra.mxu3 %v345_v31 }
  0xbf   :  { %v379_v33 = vpop.f32.mrf.mxu0 }
  0xc0   :  { %v380_v34 = vadd.f32 %v705_v32, %v379_v33 }
  0xc2   :  { %v399_v35 = vpop.f32.mrf.mxu1 }
  0xc3   :  { %v400_v36 = vadd.f32 %v399_v35, %v380_v34 }
  0xc5   :  { %v419_v37 = vpop.f32.mrf.mxu2 }
  0xc6   :  { %v420_v38 = vadd.f32 %v419_v37, %v400_v36 }
  0xc8   :  { %v439_v39 = vpop.f32.mrf.mxu3 }
  0xc9   :  { %v440_v40 = vadd.f32 %v439_v39, %v420_v38 }
  0xcb   :  { %v459_v41 = vpop.f32.mrf.mxu0 }
  0xcc   :  { %v460_v42 = vadd.f32 %v459_v41, %v440_v40 }
  0xce   :  { %v479_v43 = vpop.f32.mrf.mxu1 }
  0xcf   :  { %v480_v44 = vadd.f32 %v479_v43, %v460_v42  ;;  %v499_v45 = vpop.f32.mrf.mxu2 }
  0xd1   :  { %v500_v46 = vadd.f32 %v499_v45, %v480_v44 }
  0xd2   :  { %v519_v47 = vpop.f32.mrf.mxu3 }
  0xd3   :  { %v520_v49 = vadd.f32 %v519_v47, %v500_v46 }
  0xe3   :  { %v539_v48 = vpop.f32.mrf.mxu0 }
  0xe4   :  { %v540_v50 = vadd.f32 %v539_v48, %v520_v49 }
  0xe6   :  { %v559_v51 = vpop.f32.mrf.mxu1 }
  0xe7   :  { %v560_v53 = vadd.f32 %v559_v51, %v540_v50 }
  0xe9   :  { %v579_v52 = vpop.f32.mrf.mxu2 }
  0xea   :  { %v580_v54 = vadd.f32 %v579_v52, %v560_v53 }
  0xec   :  { %v599_v55 = vpop.f32.mrf.mxu3 }
  0xed   :  { %v600_v56 = vadd.f32 %v599_v55, %v580_v54 }
 0x105   :  { %v619_v57 = vpop.f32.mrf.mxu0 }
 0x106   :  { %v620_v58 = vadd.f32 %v619_v57, %v600_v56 }
 0x107   :  { %v639_v59 = vpop.f32.mrf.mxu1 }
 0x108   :  { %v640_v60 = vadd.f32 %v639_v59, %v620_v58 }
 0x10b   :  { %v659_v61 = vpop.f32.mrf.mxu2 }
 0x10c   :  { %v660_v62 = vadd.f32 %v659_v61, %v640_v60 }
 0x10d   :  { %v679_v63 = vpop.f32.mrf.mxu3 }
 0x10e   :  { %v680_v0 = vadd.f32 %v679_v63, %v660_v62 }
 0x110   :  { %683 = vst.msk [vmem:[#allocation2] sm:$0xff] %vm682_vm0, %v680_v0 }
 0x111   :  { %687 = vsyncadd [#allocation3], 96  ;;  %s690_s9 = sshll.u32 %s1583_s3, 4  ;;  %s732_s10 = smov [#allocation2]   ;;  %s691_s9 = int_to_ptr.hbm [resolvable:$true] %s690_s9 }
 0x112   :  { %s688_s11 = sshll.u32 %s732_s10, 4  ;;  %s733_s12 = smov 32   ;;  %s689_s11 = int_to_ptr.vmem [resolvable:$true] %s688_s11 }
 0x113   :  { %s734_s13 = smov 2  }
 0x114   :  { %696 = dma.vmem_to_hbm [thread:$0]  %s689_s11, 32, %s691_s9, [#allocation3], %s733_s12, %s733_s12, %s734_s13  }
 0x115   :  { %730 = dma.done.wait [#allocation3], 128  }
 0x116   :  { %731 = vsyncadd [#allocation3], 4294967168 }
 0x117   :  { %701 = vsyncpa [#allocation3], 1 }

// kernel: tpu_custom_call.1
= control target key start
LH: loop header
LB: loop body
LE: loop exit
PB: predicated region body
PF: predicated region fallthrough
CT: control target
= control target key end

     0   :  { %8 = vsyncpa [#allocation3], 0  ;;  %vm682_vm0 = vcmask 523264   ;;  %s1580_s0 = inlined_call_operand.vmem [shape: f32[2,2048], index: 0, kind: input, shape index: {}]   ;;  %s1581_s1 = inlined_call_operand.vmem [shape: f32[2048,64], index: 1, kind: input, shape index: {}]   ;;  %s1582_s2 = inlined_call_operand.vmem [shape: f32[1,64], index: 2, kind: input, shape index: {}]   ;;  %s1583_s3 = inlined_call_operand.hbm [shape: f32[2,64], index: 3, kind: output, shape index: {}]  }
   0x1   :  { %v46_v0 = vld [vmem:[%s1581_s1 + $0x78] sm:$0xff]  ;;  %v45_v2 = vld [vmem:[%s1581_s1 + $0x70] sm:$0xff]  ;;  %v44_v6 = vld [vmem:[%s1581_s1 + $0x68] sm:$0xff] }
   0x2   :  { %v78_v1 = vld [vmem:[%s1581_s1 + $0x178] sm:$0xff]  ;;  %362 = vmatpush.msra.mxu0 %v46_v0  ;;  %v77_v4 = vld [vmem:[%s1581_s1 + $0x170] sm:$0xff]  ;;  %v76_v8 = vld [vmem:[%s1581_s1 + $0x168] sm:$0xff] }
   0x3   :  { %402 = vmatpush.msra.mxu2 %v78_v1  ;;  %v62_v3 = vld [vmem:[%s1581_s1 + $0xf8] sm:$0xff]  ;;  %v61_v7 = vld [vmem:[%s1581_s1 + $0xf0] sm:$0xff]  ;;  %v43_v10 = vld [vmem:[%s1581_s1 + $0x60] sm:$0xff] }
   0x4   :  { %382 = vmatpush.msra.mxu1 %v62_v3  ;;  %v94_v5 = vld [vmem:[%s1581_s1 + $0x1f8] sm:$0xff]  ;;  %363 = vmatpush.msra.mxu0 %v45_v2  ;;  %v93_v9 = vld [vmem:[%s1581_s1 + $0x1f0] sm:$0xff]  ;;  %v60_v11 = vld [vmem:[%s1581_s1 + $0xe8] sm:$0xff] }
   0x5   :  { %403 = vmatpush.msra.mxu2 %v77_v4  ;;  %422 = vmatpush.msra.mxu3 %v94_v5  ;;  %v75_v12 = vld [vmem:[%s1581_s1 + $0x160] sm:$0xff]  ;;  %v92_v13 = vld [vmem:[%s1581_s1 + $0x1e8] sm:$0xff]  ;;  %v42_v15 = vld [vmem:[%s1581_s1 + $0x58] sm:$0xff] }
   0x6   :  { %383 = vmatpush.msra.mxu1 %v61_v7  ;;  %364 = vmatpush.msra.mxu0 %v44_v6  ;;  %v59_v14 = vld [vmem:[%s1581_s1 + $0xe0] sm:$0xff]  ;;  %v74_v16 = vld [vmem:[%s1581_s1 + $0x158] sm:$0xff]  ;;  %v41_v19 = vld [vmem:[%s1581_s1 + $0x50] sm:$0xff] }
   0x7   :  { %404 = vmatpush.msra.mxu2 %v76_v8  ;;  %423 = vmatpush.msra.mxu3 %v93_v9  ;;  %v91_v17 = vld [vmem:[%s1581_s1 + $0x1e0] sm:$0xff]  ;;  %v58_v18 = vld [vmem:[%s1581_s1 + $0xd8] sm:$0xff]  ;;  %v73_v20 = vld [vmem:[%s1581_s1 + $0x150] sm:$0xff] }
   0x8   :  { %384 = vmatpush.msra.mxu1 %v60_v11  ;;  %365 = vmatpush.msra.mxu0 %v43_v10  ;;  %v90_v21 = vld [vmem:[%s1581_s1 + $0x1d8] sm:$0xff]  ;;  %v57_v22 = vld [vmem:[%s1581_s1 + $0xd0] sm:$0xff]  ;;  %v40_v23 = vld [vmem:[%s1581_s1 + $0x48] sm:$0xff] }
   0x9   :  { %405 = vmatpush.msra.mxu2 %v75_v12  ;;  %424 = vmatpush.msra.mxu3 %v92_v13  ;;  %v72_v24 = vld [vmem:[%s1581_s1 + $0x148] sm:$0xff]  ;;  %v89_v25 = vld [vmem:[%s1581_s1 + $0x1d0] sm:$0xff]  ;;  %v39_v27 = vld [vmem:[%s1581_s1 + $0x40] sm:$0xff] }
   0xa   :  { %385 = vmatpush.msra.mxu1 %v59_v14  ;;  %366 = vmatpush.msra.mxu0 %v42_v15  ;;  %v56_v26 = vld [vmem:[%s1581_s1 + $0xc8] sm:$0xff]  ;;  %v71_v28 = vld [vmem:[%s1581_s1 + $0x140] sm:$0xff]  ;;  %v38_v31 = vld [vmem:[%s1581_s1 + $0x38] sm:$0xff] }
   0xb   :  { %406 = vmatpush.msra.mxu2 %v74_v16  ;;  %425 = vmatpush.msra.mxu3 %v91_v17  ;;  %v88_v29 = vld [vmem:[%s1581_s1 + $0x1c8] sm:$0xff]  ;;  %v55_v30 = vld [vmem:[%s1581_s1 + $0xc0] sm:$0xff]  ;;  %v70_v32 = vld [vmem:[%s1581_s1 + $0x138] sm:$0xff] }
   0xc   :  { %386 = vmatpush.msra.mxu1 %v58_v18  ;;  %367 = vmatpush.msra.mxu0 %v41_v19  ;;  %v87_v33 = vld [vmem:[%s1581_s1 + $0x1c0] sm:$0xff]  ;;  %v54_v34 = vld [vmem:[%s1581_s1 + $0xb8] sm:$0xff]  ;;  %v37_v35 = vld [vmem:[%s1581_s1 + $0x30] sm:$0xff] }
   0xd   :  { %407 = vmatpush.msra.mxu2 %v73_v20  ;;  %426 = vmatpush.msra.mxu3 %v90_v21  ;;  %v69_v36 = vld [vmem:[%s1581_s1 + $0x130] sm:$0xff]  ;;  %v86_v37 = vld [vmem:[%s1581_s1 + $0x1b8] sm:$0xff]  ;;  %v36_v39 = vld [vmem:[%s1581_s1 + $0x28] sm:$0xff] }
   0xe   :  { %387 = vmatpush.msra.mxu1 %v57_v22  ;;  %368 = vmatpush.msra.mxu0 %v40_v23  ;;  %v53_v38 = vld [vmem:[%s1581_s1 + $0xb0] sm:$0xff]  ;;  %v68_v40 = vld [vmem:[%s1581_s1 + $0x128] sm:$0xff]  ;;  %v35_v43 = vld [vmem:[%s1581_s1 + $0x20] sm:$0xff] }
   0xf   :  { %408 = vmatpush.msra.mxu2 %v72_v24  ;;  %427 = vmatpush.msra.mxu3 %v89_v25  ;;  %v85_v41 = vld [vmem:[%s1581_s1 + $0x1b0] sm:$0xff]  ;;  %v52_v42 = vld [vmem:[%s1581_s1 + $0xa8] sm:$0xff]  ;;  %v67_v44 = vld [vmem:[%s1581_s1 + $0x120] sm:$0xff] }
  0x10   :  { %388 = vmatpush.msra.mxu1 %v56_v26  ;;  %369 = vmatpush.msra.mxu0 %v39_v27  ;;  %v84_v45 = vld [vmem:[%s1581_s1 + $0x1a8] sm:$0xff]  ;;  %v51_v46 = vld [vmem:[%s1581_s1 + $0xa0] sm:$0xff]  ;;  %v34_v47 = vld [vmem:[%s1581_s1 + $0x18] sm:$0xff] }
  0x11   :  { %409 = vmatpush.msra.mxu2 %v71_v28  ;;  %428 = vmatpush.msra.mxu3 %v88_v29  ;;  %v66_v48 = vld [vmem:[%s1581_s1 + $0x118] sm:$0xff]  ;;  %v83_v49 = vld [vmem:[%s1581_s1 + $0x1a0] sm:$0xff]  ;;  %v33_v51 = vld [vmem:[%s1581_s1 + $0x10] sm:$0xff] }
  0x12   :  { %389 = vmatpush.msra.mxu1 %v55_v30  ;;  %370 = vmatpush.msra.mxu0 %v38_v31  ;;  %v50_v50 = vld [vmem:[%s1581_s1 + $0x98] sm:$0xff]  ;;  %v65_v52 = vld [vmem:[%s1581_s1 + $0x110] sm:$0xff]  ;;  %v32_v55 = vld [vmem:[%s1581_s1 + $0x8] sm:$0xff] }
  0x13   :  { %410 = vmatpush.msra.mxu2 %v70_v32  ;;  %429 = vmatpush.msra.mxu3 %v87_v33  ;;  %v82_v53 = vld [vmem:[%s1581_s1 + $0x198] sm:$0xff]  ;;  %v49_v54 = vld [vmem:[%s1581_s1 + $0x90] sm:$0xff]  ;;  %v64_v56 = vld [vmem:[%s1581_s1 + $0x108] sm:$0xff] }
  0x14   :  { %390 = vmatpush.msra.mxu1 %v54_v34  ;;  %371 = vmatpush.msra.mxu0 %v37_v35  ;;  %v81_v57 = vld [vmem:[%s1581_s1 + $0x190] sm:$0xff]  ;;  %v48_v58 = vld [vmem:[%s1581_s1 + $0x88] sm:$0xff]  ;;  %v31_v59 = vld [vmem:[%s1581_s1] sm:$0xff] }
  0x15   :  { %411 = vmatpush.msra.mxu2 %v69_v36  ;;  %430 = vmatpush.msra.mxu3 %v86_v37  ;;  %v63_v60 = vld [vmem:[%s1581_s1 + $0x100] sm:$0xff]  ;;  %v80_v61 = vld [vmem:[%s1581_s1 + $0x188] sm:$0xff]  ;;  %v110_v62 = vld [vmem:[%s1581_s1 + $0x278] sm:$0xff] }
  0x16   :  { %391 = vmatpush.msra.mxu1 %v53_v38  ;;  %372 = vmatpush.msra.mxu0 %v36_v39  ;;  %v142_v63 = vld [vmem:[%s1581_s1 + $0x378] sm:$0xff]  ;;  %v47_v0 = vld [vmem:[%s1581_s1 + $0x80] sm:$0xff]  ;;  %v109_v2 = vld [vmem:[%s1581_s1 + $0x270] sm:$0xff] }
  0x17   :  { %412 = vmatpush.msra.mxu2 %v68_v40  ;;  %431 = vmatpush.msra.mxu3 %v85_v41  ;;  %v79_v1 = vld [vmem:[%s1581_s1 + $0x180] sm:$0xff]  ;;  %v126_v3 = vld [vmem:[%s1581_s1 + $0x2f8] sm:$0xff]  ;;  %v141_v4 = vld [vmem:[%s1581_s1 + $0x370] sm:$0xff] }
  0x18   :  { %392 = vmatpush.msra.mxu1 %v52_v42  ;;  %373 = vmatpush.msra.mxu0 %v35_v43  ;;  %v158_v5 = vld [vmem:[%s1581_s1 + $0x3f8] sm:$0xff]  ;;  %v108_v6 = vld [vmem:[%s1581_s1 + $0x268] sm:$0xff]  ;;  %v125_v7 = vld [vmem:[%s1581_s1 + $0x2f0] sm:$0xff] }
  0x19   :  { %413 = vmatpush.msra.mxu2 %v67_v44  ;;  %432 = vmatpush.msra.mxu3 %v84_v45  ;;  %v140_v8 = vld [vmem:[%s1581_s1 + $0x368] sm:$0xff]  ;;  %v157_v9 = vld [vmem:[%s1581_s1 + $0x3f0] sm:$0xff]  ;;  %v107_v10 = vld [vmem:[%s1581_s1 + $0x260] sm:$0xff] }
  0x1a   :  { %393 = vmatpush.msra.mxu1 %v51_v46  ;;  %374 = vmatpush.msra.mxu0 %v34_v47  ;;  %v124_v11 = vld [vmem:[%s1581_s1 + $0x2e8] sm:$0xff]  ;;  %v139_v12 = vld [vmem:[%s1581_s1 + $0x360] sm:$0xff]  ;;  %v106_v14 = vld [vmem:[%s1581_s1 + $0x258] sm:$0xff] }
  0x1b   :  { %414 = vmatpush.msra.mxu2 %v66_v48  ;;  %433 = vmatpush.msra.mxu3 %v83_v49  ;;  %v156_v13 = vld [vmem:[%s1581_s1 + $0x3e8] sm:$0xff]  ;;  %v123_v15 = vld [vmem:[%s1581_s1 + $0x2e0] sm:$0xff]  ;;  %v138_v16 = vld [vmem:[%s1581_s1 + $0x358] sm:$0xff] }
  0x1c   :  { %394 = vmatpush.msra.mxu1 %v50_v50  ;;  %375 = vmatpush.msra.mxu0 %v33_v51  ;;  %v155_v17 = vld [vmem:[%s1581_s1 + $0x3e0] sm:$0xff]  ;;  %v105_v18 = vld [vmem:[%s1581_s1 + $0x250] sm:$0xff]  ;;  %v122_v19 = vld [vmem:[%s1581_s1 + $0x2d8] sm:$0xff] }
  0x1d   :  { %415 = vmatpush.msra.mxu2 %v65_v52  ;;  %434 = vmatpush.msra.mxu3 %v82_v53  ;;  %v137_v20 = vld [vmem:[%s1581_s1 + $0x350] sm:$0xff]  ;;  %v154_v21 = vld [vmem:[%s1581_s1 + $0x3d8] sm:$0xff]  ;;  %v104_v22 = vld [vmem:[%s1581_s1 + $0x248] sm:$0xff] }
  0x1e   :  { %395 = vmatpush.msra.mxu1 %v49_v54  ;;  %376 = vmatpush.msra.mxu0 %v32_v55  ;;  %v121_v23 = vld [vmem:[%s1581_s1 + $0x2d0] sm:$0xff]  ;;  %v136_v24 = vld [vmem:[%s1581_s1 + $0x348] sm:$0xff]  ;;  %v15_v26 = vld [vmem:[%s1580_s0] sm:$0xff] }
  0x1f   :  { %416 = vmatpush.msra.mxu2 %v64_v56  ;;  %435 = vmatpush.msra.mxu3 %v81_v57  ;;  %v153_v25 = vld [vmem:[%s1581_s1 + $0x3d0] sm:$0xff]  ;;  %v19_v27 = vld [vmem:[%s1580_s0 + $0x20] sm:$0xff]  ;;  %307 = vst [vmem:[#allocation1] ss:$4 sm:$0xff] %v15_v26  ;;  %v120_v31 = vld [vmem:[%s1581_s1 + $0x2c8] sm:$0xff] }
  0x20   :  { %396 = vmatpush.msra.mxu1 %v48_v58  ;;  %377 = vmatpush.msra.mxu0 %v31_v59  ;;  %v103_v28 = vld [vmem:[%s1581_s1 + $0x240] sm:$0xff]  ;;  %309 = vst [vmem:[#allocation1 + $0x1] ss:$4 sm:$0xff] %v19_v27  ;;  %v152_v33 = vld [vmem:[%s1581_s1 + $0x3c8] sm:$0xff]  ;;  %v102_v34 = vld [vmem:[%s1581_s1 + $0x238] sm:$0xff] }
  0x21   :  { %417 = vmatpush.msra.mxu2 %v63_v60  ;;  %436 = vmatpush.msra.mxu3 %v80_v61  ;;  %v23_v29 = vld [vmem:[%s1580_s0 + $0x40] sm:$0xff]  ;;  %v134_v36 = vld [vmem:[%s1581_s1 + $0x338] sm:$0xff]  ;;  %v101_v38 = vld [vmem:[%s1581_s1 + $0x230] sm:$0xff] }
  0x22   :  { %442 = vmatpush.msrb.mxu0 %v110_v62  ;;  %397 = vmatpush.msra.mxu1 %v47_v0  ;;  %v27_v30 = vld [vmem:[%s1580_s0 + $0x60] sm:$0xff]  ;;  %311 = vst [vmem:[#allocation1 + $0x2] ss:$4 sm:$0xff] %v23_v29  ;;  %v118_v39 = vld [vmem:[%s1581_s1 + $0x2b8] sm:$0xff]  ;;  %v133_v40 = vld [vmem:[%s1581_s1 + $0x330] sm:$0xff] }
  0x23   :  { %482 = vmatpush.msrb.mxu2 %v142_v63  ;;  %437 = vmatpush.msra.mxu3 %v79_v1  ;;  %v135_v32 = vld [vmem:[%s1581_s1 + $0x340] sm:$0xff]  ;;  %313 = vst [vmem:[#allocation1 + $0x3] ss:$4 sm:$0xff] %v27_v30  ;;  %v150_v41 = vld [vmem:[%s1581_s1 + $0x3b8] sm:$0xff]  ;;  %v100_v42 = vld [vmem:[%s1581_s1 + $0x228] sm:$0xff] }
  0x24   :  { %443 = vmatpush.msrb.mxu0 %v109_v2  ;;  %462 = vmatpush.msrb.mxu1 %v126_v3  ;;  %v119_v35 = vld [vmem:[%s1581_s1 + $0x2c0] sm:$0xff]  ;;  %v117_v43 = vld [vmem:[%s1581_s1 + $0x2b0] sm:$0xff]  ;;  %v132_v44 = vld [vmem:[%s1581_s1 + $0x328] sm:$0xff] }
  0x25   :  { %483 = vmatpush.msrb.mxu2 %v141_v4  ;;  %502 = vmatpush.msrb.mxu3 %v158_v5  ;;  %v151_v37 = vld [vmem:[%s1581_s1 + $0x3c0] sm:$0xff]  ;;  %v149_v45 = vld [vmem:[%s1581_s1 + $0x3b0] sm:$0xff]  ;;  %v116_v47 = vld [vmem:[%s1581_s1 + $0x2a8] sm:$0xff] }
  0x26   :  { %444 = vmatpush.msrb.mxu0 %v108_v6  ;;  %463 = vmatpush.msrb.mxu1 %v125_v7  ;;  %v99_v46 = vld [vmem:[%s1581_s1 + $0x220] sm:$0xff]  ;;  %v16_v48 = vld [vmem:[%s1580_s0 + $0x8] sm:$0xff]  ;;  %v98_v52 = vld [vmem:[%s1581_s1 + $0x218] sm:$0xff] }
  0x27   :  { %484 = vmatpush.msrb.mxu2 %v140_v8  ;;  %503 = vmatpush.msrb.mxu3 %v157_v9  ;;  %v20_v49 = vld [vmem:[%s1580_s0 + $0x28] sm:$0xff]  ;;  %v131_v50 = vld [vmem:[%s1581_s1 + $0x320] sm:$0xff]  ;;  %315 = vst [vmem:[#allocation1 + $0x20] ss:$4 sm:$0xff] %v16_v48  ;;  %v130_v54 = vld [vmem:[%s1581_s1 + $0x318] sm:$0xff] }
  0x28   :  { %445 = vmatpush.msrb.mxu0 %v107_v10  ;;  %464 = vmatpush.msrb.mxu1 %v124_v11  ;;  %v148_v51 = vld [vmem:[%s1581_s1 + $0x3a8] sm:$0xff]  ;;  %v115_v53 = vld [vmem:[%s1581_s1 + $0x2a0] sm:$0xff]  ;;  %v17_v55 = vld [vmem:[%s1580_s0 + $0x10] sm:$0xff]  ;;  %317 = vst [vmem:[#allocation1 + $0x21] ss:$4 sm:$0xff] %v20_v49 }
  0x29   :  { %485 = vmatpush.msrb.mxu2 %v139_v12  ;;  %504 = vmatpush.msrb.mxu3 %v156_v13  ;;  %v21_v56 = vld [vmem:[%s1580_s0 + $0x30] sm:$0xff]  ;;  %v147_v62 = vld [vmem:[%s1581_s1 + $0x3a0] sm:$0xff]  ;;  %v114_v1 = vld [vmem:[%s1581_s1 + $0x298] sm:$0xff] }
  0x2a   :  { %446 = vmatpush.msrb.mxu0 %v106_v14  ;;  %465 = vmatpush.msrb.mxu1 %v123_v15  ;;  %v25_v57 = vld [vmem:[%s1580_s0 + $0x50] sm:$0xff]  ;;  %v322_v58 = vld.sshfl [vmem:[#allocation1] sm:$0xff pattern:$0x73625140]  ;;  %v24_v3 = vld [vmem:[%s1580_s0 + $0x48] sm:$0xff] }
  0x2b   :  { %486 = vmatpush.msrb.mxu2 %v138_v16  ;;  %505 = vmatpush.msrb.mxu3 %v155_v17  ;;  %v324_v59 = vld.sshfl [vmem:[#allocation1 + $0x10] sm:$0xff pattern:$0x73625140]  ;;  %v323_v60 = vld.sshfl [vmem:[#allocation1 + $0x8] sm:$0xff pattern:$0x73625140] }
  0x2c   :  { %447 = vmatpush.msrb.mxu0 %v105_v18  ;;  %466 = vmatpush.msrb.mxu1 %v122_v19  ;;  %v1121_v61 = vld.sshfl [vmem:[#allocation1 + $0x18] sm:$0xff pattern:$0x73625140]  ;;  %v97_v63 = vld [vmem:[%s1581_s1 + $0x210] sm:$0xff]  ;;  %v96_v5 = vld [vmem:[%s1581_s1 + $0x208] sm:$0xff] }
  0x2d   :  { %487 = vmatpush.msrb.mxu2 %v137_v20  ;;  %506 = vmatpush.msrb.mxu3 %v154_v21  ;;  %v29_v0 = vld [vmem:[%s1580_s0 + $0x70] sm:$0xff]  ;;  %330 = vst [vmem:[#allocation1] ss:$4 sm:$0xff] %v17_v55  ;;  %v146_v4 = vld [vmem:[%s1581_s1 + $0x398] sm:$0xff]  ;;  %v28_v6 = vld [vmem:[%s1580_s0 + $0x68] sm:$0xff] }
  0x2e   :  { %448 = vmatpush.msrb.mxu0 %v104_v22  ;;  %467 = vmatpush.msrb.mxu1 %v121_v23  ;;  %v129_v2 = vld [vmem:[%s1581_s1 + $0x310] sm:$0xff]  ;;  %331 = vst [vmem:[#allocation1 + $0x1] ss:$4 sm:$0xff] %v21_v56  ;;  %v128_v8 = vld [vmem:[%s1581_s1 + $0x308] sm:$0xff]  ;;  %v95_v10 = vld [vmem:[%s1581_s1 + $0x200] sm:$0xff] }
  0x2f   :  { %488 = vmatpush.msrb.mxu2 %v136_v24  ;;  %507 = vmatpush.msrb.mxu3 %v153_v25  ;;  %332 = vst [vmem:[#allocation1 + $0x2] ss:$4 sm:$0xff] %v25_v57  ;;  %v113_v7 = vld [vmem:[%s1581_s1 + $0x290] sm:$0xff]  ;;  %v112_v11 = vld [vmem:[%s1581_s1 + $0x288] sm:$0xff]  ;;  %v127_v12 = vld [vmem:[%s1581_s1 + $0x300] sm:$0xff] }
  0x30   :  { %449 = vmatpush.msrb.mxu0 %v103_v28  ;;  %468 = vmatpush.msrb.mxu1 %v120_v31  ;;  %333 = vst [vmem:[#allocation1 + $0x3] ss:$4 sm:$0xff] %v29_v0  ;;  %v145_v9 = vld [vmem:[%s1581_s1 + $0x390] sm:$0xff]  ;;  %v144_v13 = vld [vmem:[%s1581_s1 + $0x388] sm:$0xff]  ;;  %v174_v14 = vld [vmem:[%s1581_s1 + $0x478] sm:$0xff] }
  0x31   :  { %489 = vmatpush.msrb.mxu2 %v135_v32  ;;  %508 = vmatpush.msrb.mxu3 %v152_v33  ;;  %319 = vst [vmem:[#allocation1 + $0x22] ss:$4 sm:$0xff] %v24_v3  ;;  %v206_v15 = vld [vmem:[%s1581_s1 + $0x578] sm:$0xff]  ;;  %v111_v16 = vld [vmem:[%s1581_s1 + $0x280] sm:$0xff]  ;;  %v173_v18 = vld [vmem:[%s1581_s1 + $0x470] sm:$0xff] }
  0x32   :  { %450 = vmatpush.msrb.mxu0 %v102_v34  ;;  %469 = vmatpush.msrb.mxu1 %v119_v35  ;;  %321 = vst [vmem:[#allocation1 + $0x23] ss:$4 sm:$0xff] %v28_v6  ;;  %v143_v17 = vld [vmem:[%s1581_s1 + $0x380] sm:$0xff]  ;;  %v190_v19 = vld [vmem:[%s1581_s1 + $0x4f8] sm:$0xff]  ;;  %v205_v20 = vld [vmem:[%s1581_s1 + $0x570] sm:$0xff] }
  0x33   :  { %490 = vmatpush.msrb.mxu2 %v134_v36  ;;  %509 = vmatpush.msrb.mxu3 %v151_v37  ;;  %v222_v21 = vld [vmem:[%s1581_s1 + $0x5f8] sm:$0xff]  ;;  %v172_v22 = vld [vmem:[%s1581_s1 + $0x468] sm:$0xff]  ;;  %v189_v23 = vld [vmem:[%s1581_s1 + $0x4f0] sm:$0xff] }
  0x34   :  { %451 = vmatpush.msrb.mxu0 %v101_v38  ;;  %470 = vmatpush.msrb.mxu1 %v118_v39  ;;  %v204_v24 = vld [vmem:[%s1581_s1 + $0x568] sm:$0xff]  ;;  %v18_v25 = vld [vmem:[%s1580_s0 + $0x18] sm:$0xff]  ;;  %v221_v32 = vld [vmem:[%s1581_s1 + $0x5f0] sm:$0xff] }
  0x35   :  { %491 = vmatpush.msrb.mxu2 %v133_v40  ;;  %510 = vmatpush.msrb.mxu3 %v150_v41  ;;  %v22_v26 = vld [vmem:[%s1580_s0 + $0x38] sm:$0xff]  ;;  %v171_v33 = vld [vmem:[%s1581_s1 + $0x460] sm:$0xff]  ;;  %v188_v35 = vld [vmem:[%s1581_s1 + $0x4e8] sm:$0xff] }
  0x36   :  { %452 = vmatpush.msrb.mxu0 %v100_v42  ;;  %471 = vmatpush.msrb.mxu1 %v117_v43  ;;  %v26_v27 = vld [vmem:[%s1580_s0 + $0x58] sm:$0xff]  ;;  %v203_v36 = vld [vmem:[%s1581_s1 + $0x560] sm:$0xff]  ;;  %v220_v37 = vld [vmem:[%s1581_s1 + $0x5e8] sm:$0xff] }
  0x37   :  { %492 = vmatpush.msrb.mxu2 %v132_v44  ;;  %511 = vmatpush.msrb.mxu3 %v149_v45  ;;  %v30_v34 = vld [vmem:[%s1580_s0 + $0x78] sm:$0xff]  ;;  %v187_v39 = vld [vmem:[%s1581_s1 + $0x4e0] sm:$0xff]  ;;  %v169_v42 = vld [vmem:[%s1581_s1 + $0x450] sm:$0xff] }
  0x38   :  { %453 = vmatpush.msrb.mxu0 %v99_v46  ;;  %472 = vmatpush.msrb.mxu1 %v116_v47  ;;  %v170_v38 = vld [vmem:[%s1581_s1 + $0x458] sm:$0xff]  ;;  %v219_v41 = vld [vmem:[%s1581_s1 + $0x5e0] sm:$0xff]  ;;  %v201_v44 = vld [vmem:[%s1581_s1 + $0x550] sm:$0xff] }
  0x39   :  { %493 = vmatpush.msrb.mxu2 %v131_v50  ;;  %512 = vmatpush.msrb.mxu3 %v148_v51  ;;  %v328_v28 = vld.sshfl [vmem:[#allocation1 + $0x30] sm:$0xff pattern:$0x73625140]  ;;  %v326_v29 = vld.sshfl [vmem:[#allocation1 + $0x20] sm:$0xff pattern:$0x73625140] }
  0x3a   :  { %454 = vmatpush.msrb.mxu0 %v98_v52  ;;  %473 = vmatpush.msrb.mxu1 %v115_v53  ;;  %v329_v30 = vld.sshfl [vmem:[#allocation1 + $0x38] sm:$0xff pattern:$0x73625140]  ;;  %v327_v31 = vld.sshfl [vmem:[#allocation1 + $0x28] sm:$0xff pattern:$0x73625140] }
  0x3b   :  { %494 = vmatpush.msrb.mxu2 %v130_v54  ;;  %513 = vmatpush.msrb.mxu3 %v147_v62  ;;  %334 = vst [vmem:[#allocation1 + $0x20] ss:$4 sm:$0xff] %v18_v25  ;;  %v202_v40 = vld [vmem:[%s1581_s1 + $0x558] sm:$0xff]  ;;  %v168_v46 = vld [vmem:[%s1581_s1 + $0x448] sm:$0xff]  ;;  %v185_v47 = vld [vmem:[%s1581_s1 + $0x4d0] sm:$0xff] }
  0x3c   :  { %455 = vmatpush.msrb.mxu0 %v97_v63  ;;  %474 = vmatpush.msrb.mxu1 %v114_v1  ;;  %335 = vst [vmem:[#allocation1 + $0x21] ss:$4 sm:$0xff] %v22_v26  ;;  %v186_v43 = vld [vmem:[%s1581_s1 + $0x4d8] sm:$0xff]  ;;  %v200_v48 = vld [vmem:[%s1581_s1 + $0x548] sm:$0xff]  ;;  %v217_v49 = vld [vmem:[%s1581_s1 + $0x5d0] sm:$0xff] }
  0x3d   :  { %495 = vmatpush.msrb.mxu2 %v129_v2  ;;  %514 = vmatpush.msrb.mxu3 %v146_v4  ;;  %336 = vst [vmem:[#allocation1 + $0x22] ss:$4 sm:$0xff] %v26_v27  ;;  %v218_v45 = vld [vmem:[%s1581_s1 + $0x5d8] sm:$0xff]  ;;  %v167_v50 = vld [vmem:[%s1581_s1 + $0x440] sm:$0xff]  ;;  %v184_v51 = vld [vmem:[%s1581_s1 + $0x4c8] sm:$0xff] }
  0x3e   :  { %456 = vmatpush.msrb.mxu0 %v96_v5  ;;  %475 = vmatpush.msrb.mxu1 %v113_v7  ;;  %337 = vst [vmem:[#allocation1 + $0x23] ss:$4 sm:$0xff] %v30_v34  ;;  %v199_v52 = vld [vmem:[%s1581_s1 + $0x540] sm:$0xff]  ;;  %v216_v53 = vld [vmem:[%s1581_s1 + $0x5c8] sm:$0xff]  ;;  %v166_v54 = vld [vmem:[%s1581_s1 + $0x438] sm:$0xff] }
  0x3f   :  { %496 = vmatpush.msrb.mxu2 %v128_v8  ;;  %515 = vmatpush.msrb.mxu3 %v145_v9  ;;  %v183_v55 = vld [vmem:[%s1581_s1 + $0x4c0] sm:$0xff]  ;;  %v198_v56 = vld [vmem:[%s1581_s1 + $0x538] sm:$0xff]  ;;  %v164_v62 = vld [vmem:[%s1581_s1 + $0x428] sm:$0xff] }
  0x40   :  { %457 = vmatpush.msrb.mxu0 %v95_v10  ;;  %476 = vmatpush.msrb.mxu1 %v112_v11  ;;  %v215_v57 = vld [vmem:[%s1581_s1 + $0x5c0] sm:$0xff]  ;;  %v181_v63 = vld [vmem:[%s1581_s1 + $0x4b0] sm:$0xff]  ;;  %v196_v0 = vld [vmem:[%s1581_s1 + $0x528] sm:$0xff] }
  0x41   :  { %497 = vmatpush.msrb.mxu2 %v127_v12  ;;  %516 = vmatpush.msrb.mxu3 %v144_v13  ;;  %v213_v1 = vld [vmem:[%s1581_s1 + $0x5b0] sm:$0xff]  ;;  %v163_v2 = vld [vmem:[%s1581_s1 + $0x420] sm:$0xff]  ;;  %v180_v3 = vld [vmem:[%s1581_s1 + $0x4a8] sm:$0xff] }
  0x42   :  { %378 = vmatmul.f32.vlgmr.msra.gmra.mxu0 %v322_v58  ;;  %418 = vmatmul.f32.vlgmr.msra.gmra.mxu2 %v324_v59  ;;  %v165_v58 = vld [vmem:[%s1581_s1 + $0x430] sm:$0xff]  ;;  %v182_v59 = vld [vmem:[%s1581_s1 + $0x4b8] sm:$0xff]  ;;  %v195_v4 = vld [vmem:[%s1581_s1 + $0x520] sm:$0xff] }
  0x43   :  { %522 = vmatpush.msra.mxu0 %v174_v14  ;;  %562 = vmatpush.msra.mxu2 %v206_v15  ;;  %v212_v5 = vld [vmem:[%s1581_s1 + $0x5a8] sm:$0xff]  ;;  %v162_v6 = vld [vmem:[%s1581_s1 + $0x418] sm:$0xff]  ;;  %v179_v7 = vld [vmem:[%s1581_s1 + $0x4a0] sm:$0xff] }
  0x44   :  { %477 = vmatpush.msrb.mxu1 %v111_v16  ;;  %517 = vmatpush.msrb.mxu3 %v143_v17  ;;  %v194_v8 = vld [vmem:[%s1581_s1 + $0x518] sm:$0xff]  ;;  %v211_v9 = vld [vmem:[%s1581_s1 + $0x5a0] sm:$0xff]  ;;  %v161_v10 = vld [vmem:[%s1581_s1 + $0x410] sm:$0xff] }
  0x45   :  { %398 = vmatmul.f32.vlgmr.msra.gmra.mxu1 %v323_v60  ;;  %438 = vmatmul.f32.vlgmr.msra.gmra.mxu3 %v1121_v61  ;;  %v197_v60 = vld [vmem:[%s1581_s1 + $0x530] sm:$0xff]  ;;  %v214_v61 = vld [vmem:[%s1581_s1 + $0x5b8] sm:$0xff]  ;;  %v160_v14 = vld [vmem:[%s1581_s1 + $0x408] sm:$0xff] }
  0x46   :  { %523 = vmatpush.msra.mxu0 %v173_v18  ;;  %542 = vmatpush.msra.mxu1 %v190_v19  ;;  %v178_v11 = vld [vmem:[%s1581_s1 + $0x498] sm:$0xff]  ;;  %v193_v12 = vld [vmem:[%s1581_s1 + $0x510] sm:$0xff]  ;;  %v192_v16 = vld [vmem:[%s1581_s1 + $0x508] sm:$0xff] }
  0x47   :  { %563 = vmatpush.msra.mxu2 %v205_v20  ;;  %582 = vmatpush.msra.mxu3 %v222_v21  ;;  %v210_v13 = vld [vmem:[%s1581_s1 + $0x598] sm:$0xff]  ;;  %v177_v15 = vld [vmem:[%s1581_s1 + $0x490] sm:$0xff]  ;;  %v159_v18 = vld [vmem:[%s1581_s1 + $0x400] sm:$0xff] }
  0x48   :  { %524 = vmatpush.msra.mxu0 %v172_v22  ;;  %543 = vmatpush.msra.mxu1 %v189_v23  ;;  %v209_v17 = vld [vmem:[%s1581_s1 + $0x590] sm:$0xff]  ;;  %v176_v19 = vld [vmem:[%s1581_s1 + $0x488] sm:$0xff]  ;;  %v191_v20 = vld [vmem:[%s1581_s1 + $0x500] sm:$0xff] }
  0x49   :  { %564 = vmatpush.msra.mxu2 %v204_v24  ;;  %583 = vmatpush.msra.mxu3 %v221_v32  ;;  %v208_v21 = vld [vmem:[%s1581_s1 + $0x588] sm:$0xff]  ;;  %v338_v22 = vld.sshfl [vmem:[#allocation1] sm:$0xff pattern:$0x73625140]  ;;  %v238_v24 = vld [vmem:[%s1581_s1 + $0x678] sm:$0xff] }
  0x4a   :  { %525 = vmatpush.msra.mxu0 %v171_v33  ;;  %544 = vmatpush.msra.mxu1 %v188_v35  ;;  %v340_v23 = vld.sshfl [vmem:[#allocation1 + $0x10] sm:$0xff pattern:$0x73625140]  ;;  %v270_v25 = vld [vmem:[%s1581_s1 + $0x778] sm:$0xff]  ;;  %v175_v26 = vld [vmem:[%s1581_s1 + $0x480] sm:$0xff] }
  0x4b   :  { %565 = vmatpush.msra.mxu2 %v203_v36  ;;  %584 = vmatpush.msra.mxu3 %v220_v37  ;;  %v207_v27 = vld [vmem:[%s1581_s1 + $0x580] sm:$0xff]  ;;  %v269_v32 = vld [vmem:[%s1581_s1 + $0x770] sm:$0xff]  ;;  %v286_v33 = vld [vmem:[%s1581_s1 + $0x7f8] sm:$0xff] }
  0x4c   :  { %498 = vmatmul.f32.vlgmr.msrb.gmra.mxu2 %v328_v28  ;;  %526 = vmatpush.msra.mxu0 %v170_v38  ;;  %v339_v28 = vld.sshfl [vmem:[#allocation1 + $0x8] sm:$0xff pattern:$0x73625140]  ;;  %v253_v35 = vld [vmem:[%s1581_s1 + $0x6f0] sm:$0xff]  ;;  %v235_v38 = vld [vmem:[%s1581_s1 + $0x660] sm:$0xff] }
  0x4d   :  { %545 = vmatpush.msra.mxu1 %v187_v39  ;;  %566 = vmatpush.msra.mxu2 %v202_v40  ;;  %v236_v34 = vld [vmem:[%s1581_s1 + $0x668] sm:$0xff]  ;;  %v285_v37 = vld [vmem:[%s1581_s1 + $0x7f0] sm:$0xff]  ;;  %v267_v40 = vld [vmem:[%s1581_s1 + $0x760] sm:$0xff] }
  0x4e   :  { %585 = vmatpush.msra.mxu3 %v219_v41  ;;  %458 = vmatmul.f32.vlgmr.msrb.gmra.mxu0 %v326_v29  ;;  %v341_v29 = vld.sshfl [vmem:[#allocation1 + $0x18] sm:$0xff pattern:$0x73625140]  ;;  %v268_v36 = vld [vmem:[%s1581_s1 + $0x768] sm:$0xff] }
  0x4f   :  { %518 = vmatmul.f32.vlgmr.msrb.gmra.mxu3 %v329_v30  ;;  %527 = vmatpush.msra.mxu0 %v169_v42  ;;  %v237_v30 = vld [vmem:[%s1581_s1 + $0x670] sm:$0xff]  ;;  %v252_v39 = vld [vmem:[%s1581_s1 + $0x6e8] sm:$0xff]  ;;  %v234_v42 = vld [vmem:[%s1581_s1 + $0x658] sm:$0xff] }
  0x50   :  { %546 = vmatpush.msra.mxu1 %v186_v43  ;;  %567 = vmatpush.msra.mxu2 %v201_v44  ;;  %v284_v41 = vld [vmem:[%s1581_s1 + $0x7e8] sm:$0xff]  ;;  %v251_v43 = vld [vmem:[%s1581_s1 + $0x6e0] sm:$0xff]  ;;  %v266_v44 = vld [vmem:[%s1581_s1 + $0x758] sm:$0xff] }
  0x51   :  { %586 = vmatpush.msra.mxu3 %v218_v45  ;;  %478 = vmatmul.f32.vlgmr.msrb.gmra.mxu1 %v327_v31  ;;  %v254_v31 = vld [vmem:[%s1581_s1 + $0x6f8] sm:$0xff]  ;;  %v283_v45 = vld [vmem:[%s1581_s1 + $0x7e0] sm:$0xff] }
  0x52   :  { %528 = vmatpush.msra.mxu0 %v168_v46  ;;  %547 = vmatpush.msra.mxu1 %v185_v47  ;;  %v233_v46 = vld [vmem:[%s1581_s1 + $0x650] sm:$0xff]  ;;  %v250_v47 = vld [vmem:[%s1581_s1 + $0x6d8] sm:$0xff] }
  0x53   :  { %568 = vmatpush.msra.mxu2 %v200_v48  ;;  %587 = vmatpush.msra.mxu3 %v217_v49  ;;  %v265_v48 = vld [vmem:[%s1581_s1 + $0x750] sm:$0xff]  ;;  %v282_v49 = vld [vmem:[%s1581_s1 + $0x7d8] sm:$0xff] }
  0x54   :  { %529 = vmatpush.msra.mxu0 %v167_v50  ;;  %548 = vmatpush.msra.mxu1 %v184_v51  ;;  %v232_v50 = vld [vmem:[%s1581_s1 + $0x648] sm:$0xff]  ;;  %v249_v51 = vld [vmem:[%s1581_s1 + $0x6d0] sm:$0xff] }
  0x55   :  { %569 = vmatpush.msra.mxu2 %v199_v52  ;;  %588 = vmatpush.msra.mxu3 %v216_v53  ;;  %v264_v52 = vld [vmem:[%s1581_s1 + $0x748] sm:$0xff]  ;;  %v281_v53 = vld [vmem:[%s1581_s1 + $0x7d0] sm:$0xff] }
  0x56   :  { %530 = vmatpush.msra.mxu0 %v166_v54  ;;  %549 = vmatpush.msra.mxu1 %v183_v55  ;;  %v231_v54 = vld [vmem:[%s1581_s1 + $0x640] sm:$0xff]  ;;  %v248_v55 = vld [vmem:[%s1581_s1 + $0x6c8] sm:$0xff] }
  0x57   :  { %570 = vmatpush.msra.mxu2 %v198_v56  ;;  %589 = vmatpush.msra.mxu3 %v215_v57  ;;  %v263_v56 = vld [vmem:[%s1581_s1 + $0x740] sm:$0xff]  ;;  %v280_v57 = vld [vmem:[%s1581_s1 + $0x7c8] sm:$0xff] }
  0x58   :  { %531 = vmatpush.msra.mxu0 %v165_v58  ;;  %550 = vmatpush.msra.mxu1 %v182_v59  ;;  %v230_v58 = vld [vmem:[%s1581_s1 + $0x638] sm:$0xff]  ;;  %v247_v59 = vld [vmem:[%s1581_s1 + $0x6c0] sm:$0xff] }
  0x59   :  { %571 = vmatpush.msra.mxu2 %v197_v60  ;;  %590 = vmatpush.msra.mxu3 %v214_v61  ;;  %v262_v60 = vld [vmem:[%s1581_s1 + $0x738] sm:$0xff]  ;;  %v279_v61 = vld [vmem:[%s1581_s1 + $0x7c0] sm:$0xff] }
  0x5a   :  { %532 = vmatpush.msra.mxu0 %v164_v62  ;;  %551 = vmatpush.msra.mxu1 %v181_v63  ;;  %v229_v62 = vld [vmem:[%s1581_s1 + $0x630] sm:$0xff]  ;;  %v246_v63 = vld [vmem:[%s1581_s1 + $0x6b8] sm:$0xff] }
  0x5b   :  { %572 = vmatpush.msra.mxu2 %v196_v0  ;;  %591 = vmatpush.msra.mxu3 %v213_v1  ;;  %v261_v0 = vld [vmem:[%s1581_s1 + $0x730] sm:$0xff]  ;;  %v278_v1 = vld [vmem:[%s1581_s1 + $0x7b8] sm:$0xff] }
  0x5c   :  { %533 = vmatpush.msra.mxu0 %v163_v2  ;;  %552 = vmatpush.msra.mxu1 %v180_v3  ;;  %v228_v2 = vld [vmem:[%s1581_s1 + $0x628] sm:$0xff]  ;;  %v245_v3 = vld [vmem:[%s1581_s1 + $0x6b0] sm:$0xff] }
  0x5d   :  { %573 = vmatpush.msra.mxu2 %v195_v4  ;;  %592 = vmatpush.msra.mxu3 %v212_v5  ;;  %v260_v4 = vld [vmem:[%s1581_s1 + $0x728] sm:$0xff]  ;;  %v277_v5 = vld [vmem:[%s1581_s1 + $0x7b0] sm:$0xff] }
  0x5e   :  { %534 = vmatpush.msra.mxu0 %v162_v6  ;;  %553 = vmatpush.msra.mxu1 %v179_v7  ;;  %v227_v6 = vld [vmem:[%s1581_s1 + $0x620] sm:$0xff]  ;;  %v244_v7 = vld [vmem:[%s1581_s1 + $0x6a8] sm:$0xff] }
  0x5f   :  { %574 = vmatpush.msra.mxu2 %v194_v8  ;;  %593 = vmatpush.msra.mxu3 %v211_v9  ;;  %v259_v8 = vld [vmem:[%s1581_s1 + $0x720] sm:$0xff]  ;;  %v276_v9 = vld [vmem:[%s1581_s1 + $0x7a8] sm:$0xff] }
  0x60   :  { %535 = vmatpush.msra.mxu0 %v161_v10  ;;  %554 = vmatpush.msra.mxu1 %v178_v11  ;;  %v226_v10 = vld [vmem:[%s1581_s1 + $0x618] sm:$0xff]  ;;  %v243_v11 = vld [vmem:[%s1581_s1 + $0x6a0] sm:$0xff] }
  0x61   :  { %575 = vmatpush.msra.mxu2 %v193_v12  ;;  %594 = vmatpush.msra.mxu3 %v210_v13  ;;  %v258_v12 = vld [vmem:[%s1581_s1 + $0x718] sm:$0xff]  ;;  %v275_v13 = vld [vmem:[%s1581_s1 + $0x7a0] sm:$0xff] }
  0x62   :  { %536 = vmatpush.msra.mxu0 %v160_v14  ;;  %555 = vmatpush.msra.mxu1 %v177_v15  ;;  %v225_v14 = vld [vmem:[%s1581_s1 + $0x610] sm:$0xff]  ;;  %v242_v15 = vld [vmem:[%s1581_s1 + $0x698] sm:$0xff] }
  0x63   :  { %576 = vmatpush.msra.mxu2 %v192_v16  ;;  %595 = vmatpush.msra.mxu3 %v209_v17  ;;  %v257_v16 = vld [vmem:[%s1581_s1 + $0x710] sm:$0xff]  ;;  %v274_v17 = vld [vmem:[%s1581_s1 + $0x798] sm:$0xff] }
  0x64   :  { %537 = vmatpush.msra.mxu0 %v159_v18  ;;  %556 = vmatpush.msra.mxu1 %v176_v19  ;;  %v224_v18 = vld [vmem:[%s1581_s1 + $0x608] sm:$0xff]  ;;  %v241_v19 = vld [vmem:[%s1581_s1 + $0x690] sm:$0xff] }
  0x65   :  { %577 = vmatpush.msra.mxu2 %v191_v20  ;;  %596 = vmatpush.msra.mxu3 %v208_v21  ;;  %v256_v20 = vld [vmem:[%s1581_s1 + $0x708] sm:$0xff]  ;;  %v273_v21 = vld [vmem:[%s1581_s1 + $0x790] sm:$0xff] }
  0x66   :  { %538 = vmatmul.f32.vlgmr.msra.gmra.mxu0 %v338_v22  ;;  %578 = vmatmul.f32.vlgmr.msra.gmra.mxu2 %v340_v23  ;;  %v223_v22 = vld [vmem:[%s1581_s1 + $0x600] sm:$0xff]  ;;  %v240_v23 = vld [vmem:[%s1581_s1 + $0x688] sm:$0xff] }
  0x67   :  { %602 = vmatpush.msrb.mxu0 %v238_v24  ;;  %642 = vmatpush.msrb.mxu2 %v270_v25  ;;  %v255_v24 = vld [vmem:[%s1581_s1 + $0x700] sm:$0xff]  ;;  %v272_v25 = vld [vmem:[%s1581_s1 + $0x788] sm:$0xff] }
  0x68   :  { %557 = vmatpush.msra.mxu1 %v175_v26  ;;  %597 = vmatpush.msra.mxu3 %v207_v27  ;;  %v342_v26 = vld.sshfl [vmem:[#allocation1 + $0x20] sm:$0xff pattern:$0x73625140]  ;;  %v344_v27 = vld.sshfl [vmem:[#allocation1 + $0x30] sm:$0xff pattern:$0x73625140] }
  0x69   :  { %558 = vmatmul.f32.vlgmr.msra.gmra.mxu1 %v339_v28  ;;  %598 = vmatmul.f32.vlgmr.msra.gmra.mxu3 %v341_v29  ;;  %v239_v28 = vld [vmem:[%s1581_s1 + $0x680] sm:$0xff] }
  0x6a   :  { %603 = vmatpush.msrb.mxu0 %v237_v30  ;;  %622 = vmatpush.msrb.mxu1 %v254_v31  ;;  %v271_v29 = vld [vmem:[%s1581_s1 + $0x780] sm:$0xff]  ;;  %v343_v30 = vld.sshfl [vmem:[#allocation1 + $0x28] sm:$0xff pattern:$0x73625140] }
  0x6b   :  { %643 = vmatpush.msrb.mxu2 %v269_v32  ;;  %662 = vmatpush.msrb.mxu3 %v286_v33  ;;  %v345_v31 = vld.sshfl [vmem:[#allocation1 + $0x38] sm:$0xff pattern:$0x73625140]  ;;  %v705_v32 = vld [vmem:[%s1582_s2] ss:$0 sm:$0xff] }
  0x6c   :  { %604 = vmatpush.msrb.mxu0 %v236_v34  ;;  %623 = vmatpush.msrb.mxu1 %v253_v35 }
  0x6d   :  { %644 = vmatpush.msrb.mxu2 %v268_v36  ;;  %663 = vmatpush.msrb.mxu3 %v285_v37 }
  0x6e   :  { %605 = vmatpush.msrb.mxu0 %v235_v38  ;;  %624 = vmatpush.msrb.mxu1 %v252_v39 }
  0x6f   :  { %645 = vmatpush.msrb.mxu2 %v267_v40  ;;  %664 = vmatpush.msrb.mxu3 %v284_v41 }
  0x70   :  { %606 = vmatpush.msrb.mxu0 %v234_v42  ;;  %625 = vmatpush.msrb.mxu1 %v251_v43 }
  0x71   :  { %646 = vmatpush.msrb.mxu2 %v266_v44  ;;  %665 = vmatpush.msrb.mxu3 %v283_v45 }
  0x72   :  { %607 = vmatpush.msrb.mxu0 %v233_v46  ;;  %626 = vmatpush.msrb.mxu1 %v250_v47 }
  0x73   :  { %647 = vmatpush.msrb.mxu2 %v265_v48  ;;  %666 = vmatpush.msrb.mxu3 %v282_v49 }
  0x74   :  { %608 = vmatpush.msrb.mxu0 %v232_v50  ;;  %627 = vmatpush.msrb.mxu1 %v249_v51 }
  0x75   :  { %648 = vmatpush.msrb.mxu2 %v264_v52  ;;  %667 = vmatpush.msrb.mxu3 %v281_v53 }
  0x76   :  { %609 = vmatpush.msrb.mxu0 %v231_v54  ;;  %628 = vmatpush.msrb.mxu1 %v248_v55 }
  0x77   :  { %649 = vmatpush.msrb.mxu2 %v263_v56  ;;  %668 = vmatpush.msrb.mxu3 %v280_v57 }
  0x78   :  { %610 = vmatpush.msrb.mxu0 %v230_v58  ;;  %629 = vmatpush.msrb.mxu1 %v247_v59 }
  0x79   :  { %650 = vmatpush.msrb.mxu2 %v262_v60  ;;  %669 = vmatpush.msrb.mxu3 %v279_v61 }
  0x7a   :  { %611 = vmatpush.msrb.mxu0 %v229_v62  ;;  %630 = vmatpush.msrb.mxu1 %v246_v63 }
  0x7b   :  { %651 = vmatpush.msrb.mxu2 %v261_v0  ;;  %670 = vmatpush.msrb.mxu3 %v278_v1 }
  0x7c   :  { %612 = vmatpush.msrb.mxu0 %v228_v2  ;;  %631 = vmatpush.msrb.mxu1 %v245_v3 }
  0x7d   :  { %652 = vmatpush.msrb.mxu2 %v260_v4  ;;  %671 = vmatpush.msrb.mxu3 %v277_v5 }
  0x7e   :  { %613 = vmatpush.msrb.mxu0 %v227_v6  ;;  %632 = vmatpush.msrb.mxu1 %v244_v7 }
  0x7f   :  { %653 = vmatpush.msrb.mxu2 %v259_v8  ;;  %672 = vmatpush.msrb.mxu3 %v276_v9 }
  0x80   :  { %614 = vmatpush.msrb.mxu0 %v226_v10  ;;  %633 = vmatpush.msrb.mxu1 %v243_v11 }
  0x81   :  { %654 = vmatpush.msrb.mxu2 %v258_v12  ;;  %673 = vmatpush.msrb.mxu3 %v275_v13 }
  0x82   :  { %615 = vmatpush.msrb.mxu0 %v225_v14  ;;  %634 = vmatpush.msrb.mxu1 %v242_v15 }
  0x83   :  { %655 = vmatpush.msrb.mxu2 %v257_v16  ;;  %674 = vmatpush.msrb.mxu3 %v274_v17 }
  0x84   :  { %616 = vmatpush.msrb.mxu0 %v224_v18  ;;  %635 = vmatpush.msrb.mxu1 %v241_v19 }
  0x85   :  { %656 = vmatpush.msrb.mxu2 %v256_v20  ;;  %675 = vmatpush.msrb.mxu3 %v273_v21 }
  0x86   :  { %617 = vmatpush.msrb.mxu0 %v223_v22  ;;  %636 = vmatpush.msrb.mxu1 %v240_v23 }
  0x87   :  { %657 = vmatpush.msrb.mxu2 %v255_v24  ;;  %676 = vmatpush.msrb.mxu3 %v272_v25 }
  0x88   :  { %618 = vmatmul.f32.vlgmr.msrb.gmra.mxu0 %v342_v26  ;;  %658 = vmatmul.f32.vlgmr.msrb.gmra.mxu2 %v344_v27 }
  0x89   :  { %637 = vmatpush.msrb.mxu1 %v239_v28  ;;  %677 = vmatpush.msrb.mxu3 %v271_v29 }
  0x8a   :  { %638 = vmatmul.f32.vlgmr.msrb.gmra.mxu1 %v343_v30  ;;  %678 = vmatmul.f32.vlgmr.msrb.gmra.mxu3 %v345_v31 }
  0xbf   :  { %v379_v33 = vpop.f32.mrf.mxu0 }
  0xc0   :  { %v380_v34 = vadd.f32 %v705_v32, %v379_v33 }
  0xc2   :  { %v399_v35 = vpop.f32.mrf.mxu1 }
  0xc3   :  { %v400_v36 = vadd.f32 %v399_v35, %v380_v34 }
  0xc5   :  { %v419_v37 = vpop.f32.mrf.mxu2 }
  0xc6   :  { %v420_v38 = vadd.f32 %v419_v37, %v400_v36 }
  0xc8   :  { %v439_v39 = vpop.f32.mrf.mxu3 }
  0xc9   :  { %v440_v40 = vadd.f32 %v439_v39, %v420_v38 }
  0xcb   :  { %v459_v41 = vpop.f32.mrf.mxu0 }
  0xcc   :  { %v460_v42 = vadd.f32 %v459_v41, %v440_v40 }
  0xce   :  { %v479_v43 = vpop.f32.mrf.mxu1 }
  0xcf   :  { %v480_v44 = vadd.f32 %v479_v43, %v460_v42  ;;  %v499_v45 = vpop.f32.mrf.mxu2 }
  0xd1   :  { %v500_v46 = vadd.f32 %v499_v45, %v480_v44 }
  0xd2   :  { %v519_v47 = vpop.f32.mrf.mxu3 }
  0xd3   :  { %v520_v49 = vadd.f32 %v519_v47, %v500_v46 }
  0xe3   :  { %v539_v48 = vpop.f32.mrf.mxu0 }
  0xe4   :  { %v540_v50 = vadd.f32 %v539_v48, %v520_v49 }
  0xe6   :  { %v559_v51 = vpop.f32.mrf.mxu1 }
  0xe7   :  { %v560_v53 = vadd.f32 %v559_v51, %v540_v50 }
  0xe9   :  { %v579_v52 = vpop.f32.mrf.mxu2 }
  0xea   :  { %v580_v54 = vadd.f32 %v579_v52, %v560_v53 }
  0xec   :  { %v599_v55 = vpop.f32.mrf.mxu3 }
  0xed   :  { %v600_v56 = vadd.f32 %v599_v55, %v580_v54 }
 0x105   :  { %v619_v57 = vpop.f32.mrf.mxu0 }
 0x106   :  { %v620_v58 = vadd.f32 %v619_v57, %v600_v56 }
 0x107   :  { %v639_v59 = vpop.f32.mrf.mxu1 }
 0x108   :  { %v640_v60 = vadd.f32 %v639_v59, %v620_v58 }
 0x10b   :  { %v659_v61 = vpop.f32.mrf.mxu2 }
 0x10c   :  { %v660_v62 = vadd.f32 %v659_v61, %v640_v60 }
 0x10d   :  { %v679_v63 = vpop.f32.mrf.mxu3 }
 0x10e   :  { %v680_v0 = vadd.f32 %v679_v63, %v660_v62 }
 0x110   :  { %683 = vst.msk [vmem:[#allocation2] sm:$0xff] %vm682_vm0, %v680_v0 }
 0x111   :  { %687 = vsyncadd [#allocation3], 96  ;;  %s690_s9 = sshll.u32 %s1583_s3, 4  ;;  %s732_s10 = smov [#allocation2]   ;;  %s691_s9 = int_to_ptr.hbm [resolvable:$true] %s690_s9 }
 0x112   :  { %s688_s11 = sshll.u32 %s732_s10, 4  ;;  %s733_s12 = smov 32   ;;  %s689_s11 = int_to_ptr.vmem [resolvable:$true] %s688_s11 }
 0x113   :  { %s734_s13 = smov 2  }
 0x114   :  { %696 = dma.vmem_to_hbm [thread:$0]  %s689_s11, 32, %s691_s9, [#allocation3], %s733_s12, %s733_s12, %s734_s13  }
 0x115   :  { %730 = dma.done.wait [#allocation3], 128  }
 0x116   :  { %731 = vsyncadd [#allocation3], 4294967168 }
 0x117   :  { %701 = vsyncpa [#allocation3], 1 }

</bundles_post_ra>
